<compile_context>
chip_gen: v7x
topology: tpu7x:2x2x1
jax: 0.10.0
libtpu: 0.0.40
codegen_flags: <defaults>
</compile_context>

<pallas_src>
import functools

import jax
import jax.numpy as jnp
from jax.experimental import pallas as pl
from jax.experimental.pallas import tpu as pltpu

NUM_BLOCKS = 4
BN_EPS = 1e-5
OUT_PAD = 128            # lane-dense padded classifier width
DEFAULT_TILE_B = 1024    # batch rows per grid step (adaptive clamp for small B)


def _round_up(n, m):
    return ((n + m - 1) // m) * m


def ehr_kernel(x_ref, emb_w_ref, emb_b_ref,
               w1_ref, b1_ref, w2_ref, b2_ref,
               fc_w_ref, fc_b_ref, out_ref):
    # Embedding: (TB, in)bf16 @ (in, d)bf16 -> f32, + (1, d)f32 bias.
    h = jnp.dot(x_ref[...], emb_w_ref[...],
                preferred_element_type=jnp.float32) + emb_b_ref[...]

    # Four residual MLP blocks (statically unrolled).  BatchNorm is folded
    # into w1/b1 on the host, so each block is two MXU matmuls + ReLU.
    for blk in range(NUM_BLOCKS):
        y = jnp.dot(h.astype(jnp.bfloat16), w1_ref[blk],
                    preferred_element_type=jnp.float32) + b1_ref[blk]
        y = jnp.maximum(y, 0.0)
        # Dropout(0.2): identity in eval mode.
        y = jnp.dot(y.astype(jnp.bfloat16), w2_ref[blk],
                    preferred_element_type=jnp.float32) + b2_ref[blk]
        h = h + y

    # Classifier head (padded to 128 lanes) + sigmoid; bf16 lane-dense store.
    logits = jnp.dot(h.astype(jnp.bfloat16), fc_w_ref[...],
                     preferred_element_type=jnp.float32) + fc_b_ref[...]
    out_ref[...] = jax.nn.sigmoid(logits).astype(out_ref.dtype)


def pack_params(p):
    """Fold eval-mode BN into Linear1, cast matmul weights to bf16, pad fc."""
    d_model = p["emb_w"].shape[1]
    num_classes = int(p["fc_w"].shape[1])

    inv = p["bn_g"] * jax.lax.rsqrt(p["bn_v"] + BN_EPS)       # (4, d)
    shift = p["bn_b"] - p["bn_m"] * inv                       # (4, d)
    # BN(x) @ W1 + b1  ==  x @ (inv[:,None]*W1) + (shift @ W1 + b1)
    w1_f = (inv[:, :, None] * p["w1"]).astype(jnp.bfloat16)   # (4, d, 2d)
    b1_f = (jnp.einsum("bd,bdh->bh", shift, p["w1"])
            + p["b1"])[:, None, :].astype(jnp.float32)        # (4, 1, 2d)

    out_pad = max(OUT_PAD, _round_up(num_classes, 128))
    fc_w = jnp.zeros((d_model, out_pad), jnp.float32)
    fc_w = fc_w.at[:, :num_classes].set(p["fc_w"]).astype(jnp.bfloat16)
    fc_b = jnp.zeros((1, out_pad), jnp.float32)
    fc_b = fc_b.at[:, :num_classes].set(p["fc_b"])

    return {
        "emb_w": p["emb_w"].astype(jnp.bfloat16),              # (in, d)   bf16
        "emb_b": p["emb_b"].astype(jnp.float32),               # (1, d)    f32
        "w1": w1_f,                                            # (4, d, 2d) bf16
        "b1": b1_f,                                            # (4, 1, 2d) f32
        "w2": p["w2"].astype(jnp.bfloat16),                    # (4, 2d, d) bf16
        "b2": p["b2"][:, None, :].astype(jnp.float32),         # (4, 1, d)  f32
        "fc_w": fc_w,                                          # (d, out_pad) bf16
        "fc_b": fc_b,                                          # (1, out_pad) f32
        "num_classes": num_classes,                            # python int (static)
    }


@functools.partial(jax.jit, static_argnames=("tile_b", "num_classes"))
def _ehr_forward_impl(x, kp, tile_b, num_classes):
    B, input_size = x.shape
    d_model = kp["emb_w"].shape[1]
    out_pad = kp["fc_w"].shape[1]

    # ---- Tile / grid selection (balanced tiles, 16-row multiples) ----------
    num_tiles = max(1, pl.cdiv(B, tile_b))
    if B > 16 and num_tiles < 2:
        num_tiles = 2                     # >=2 grid steps so v7x megacore splits
    tb = _round_up(pl.cdiv(B, num_tiles), 16)
    b_pad = num_tiles * tb

    x_p = x
    if b_pad != B:
        x_p = jnp.pad(x, ((0, b_pad - B), (0, 0)))
    x_p = x_p.astype(jnp.bfloat16)

    grid = (num_tiles,)
    in_specs = [
        # Activations: one batch tile per grid step.
        pl.BlockSpec((tb, input_size), lambda i: (i, 0)),
        # Weights / biases: constant index_map -> resident in VMEM across tiles.
        pl.BlockSpec((input_size, d_model), lambda i: (0, 0)),
        pl.BlockSpec((1, d_model), lambda i: (0, 0)),
        pl.BlockSpec((NUM_BLOCKS, d_model, 2 * d_model), lambda i: (0, 0, 0)),
        pl.BlockSpec((NUM_BLOCKS, 1, 2 * d_model), lambda i: (0, 0, 0)),
        pl.BlockSpec((NUM_BLOCKS, 2 * d_model, d_model), lambda i: (0, 0, 0)),
        pl.BlockSpec((NUM_BLOCKS, 1, d_model), lambda i: (0, 0, 0)),
        pl.BlockSpec((d_model, out_pad), lambda i: (0, 0)),
        pl.BlockSpec((1, out_pad), lambda i: (0, 0)),
    ]
    out_spec = pl.BlockSpec((tb, out_pad), lambda i: (i, 0))

    out_padded = pl.pallas_call(
        ehr_kernel,
        out_shape=jax.ShapeDtypeStruct((b_pad, out_pad), jnp.bfloat16),
        grid=grid,
        in_specs=in_specs,
        out_specs=out_spec,
        compiler_params=pltpu.CompilerParams(
            dimension_semantics=("parallel",),
            vmem_limit_bytes=32 * 1024 * 1024,
        ),
    )(x_p, kp["emb_w"], kp["emb_b"],
      kp["w1"], kp["b1"], kp["w2"], kp["b2"],
      kp["fc_w"], kp["fc_b"])

    # num_classes / B are static Python ints here -> plain static slice.
    return out_padded[:B, :num_classes].astype(jnp.float32)


def ehr_forward(x, kernel_params, tile_b=DEFAULT_TILE_B):
    num_classes = int(kernel_params["num_classes"])
    arrays = {k: v for k, v in kernel_params.items() if k != "num_classes"}
    return _ehr_forward_impl(x, arrays, tile_b, num_classes)


def make_params(key, input_size, d_model, num_classes):
    """Raw f32 parameters matching the PyTorch module (eval mode)."""
    ks = jax.random.split(key, 12)
    f32 = jnp.float32
    return {
        "emb_w": 0.05 * jax.random.normal(ks[0], (input_size, d_model), f32),
        "emb_b": 0.05 * jax.random.normal(ks[1], (1, d_model), f32),
        "bn_g": 1.0 + 0.05 * jax.random.normal(ks[2], (NUM_BLOCKS, d_model), f32),
        "bn_b": 0.05 * jax.random.normal(ks[3], (NUM_BLOCKS, d_model), f32),
        "bn_m": 0.05 * jax.random.normal(ks[4], (NUM_BLOCKS, d_model), f32),
        "bn_v": 1.0 + 0.1 * jnp.abs(jax.random.normal(ks[5], (NUM_BLOCKS, d_model), f32)),
        "w1": 0.05 * jax.random.normal(ks[6], (NUM_BLOCKS, d_model, 2 * d_model), f32),
        "b1": 0.05 * jax.random.normal(ks[7], (NUM_BLOCKS, 2 * d_model), f32),
        "w2": 0.05 * jax.random.normal(ks[8], (NUM_BLOCKS, 2 * d_model, d_model), f32),
        "b2": 0.05 * jax.random.normal(ks[9], (NUM_BLOCKS, d_model), f32),
        "fc_w": 0.05 * jax.random.normal(ks[10], (d_model, num_classes), f32),
        "fc_b": 0.05 * jax.random.normal(ks[11], (1, num_classes), f32),
    }


def ehr_reference(x, p):
    """Plain-JAX f32 reference mirroring the PyTorch forward (eval mode)."""
    h = x @ p["emb_w"] + p["emb_b"]
    for blk in range(NUM_BLOCKS):
        y = (h - p["bn_m"][blk]) * (p["bn_g"][blk]
                                    * jax.lax.rsqrt(p["bn_v"][blk] + BN_EPS)) + p["bn_b"][blk]
        y = jnp.maximum(y @ p["w1"][blk] + p["b1"][blk], 0.0)
        y = y @ p["w2"][blk] + p["b2"][blk]
        h = h + y
    return jax.nn.sigmoid(h @ p["fc_w"] + p["fc_b"])


if __name__ == "__main__":
    input_size = 16
    d_model = 192          # module default
    num_classes = 4

    key = jax.random.PRNGKey(0)
    k_x, k_x2, k_p = jax.random.split(key, 3)
    params = make_params(k_p, input_size, d_model, num_classes)
    kparams = pack_params(params)

    # Small batch (single grid step).
    B = 8
    x = jax.random.normal(k_x, (B, input_size), jnp.float32)
    out = jax.block_until_ready(ehr_forward(x, kparams))
    ref = ehr_reference(x, params)
    assert out.shape == (B, num_classes)
    assert bool(jnp.all(jnp.isfinite(out)))
    assert bool(jnp.allclose(out, ref, atol=2e-2, rtol=2e-2))

    # Larger, non-multiple batch: exercises balanced 2-tile grid + padding path.
    B2 = 300
    x2 = jax.random.normal(k_x2, (B2, input_size), jnp.float32)
    out2 = jax.block_until_ready(ehr_forward(x2, kparams))
    ref2 = ehr_reference(x2, params)
    assert out2.shape == (B2, num_classes)
    assert bool(jnp.all(jnp.isfinite(out2)))
    assert bool(jnp.allclose(out2, ref2, atol=2e-2, rtol=2e-2))

    print("KERNEL_OK")
</pallas_src>

<mosaic_0001>
module attributes {stable_mosaic.version = 11 : i64} {
  func.func @ehr_kernel(%arg0: i32, %arg1: memref<16x16xbf16, #tpu.memory_space<vmem>>, %arg2: memref<16x192xbf16, #tpu.memory_space<vmem>>, %arg3: memref<1x192xf32, #tpu.memory_space<vmem>>, %arg4: memref<4x192x384xbf16, #tpu.memory_space<vmem>>, %arg5: memref<4x1x384xf32, #tpu.memory_space<vmem>>, %arg6: memref<4x384x192xbf16, #tpu.memory_space<vmem>>, %arg7: memref<4x1x192xf32, #tpu.memory_space<vmem>>, %arg8: memref<192x128xbf16, #tpu.memory_space<vmem>>, %arg9: memref<1x128xf32, #tpu.memory_space<vmem>>, %arg10: memref<16x128xbf16, #tpu.memory_space<vmem>>) attributes {dimension_semantics = [#tpu.dimension_semantics<parallel>], iteration_bounds = array<i64: 1>, scalar_prefetch = 0 : i64, scratch_operands = 0 : i64, tpu.core_type = #tpu.core_type<tc>, window_params = [{transform_indices = @transform_0, window_bounds = array<i64: 16, 16>}, {pipeline_mode = #tpu.pipeline_mode<synchronous>, transform_indices = @transform_1, window_bounds = array<i64: 16, 192>}, {pipeline_mode = #tpu.pipeline_mode<synchronous>, transform_indices = @transform_2, window_bounds = array<i64: 1, 192>}, {pipeline_mode = #tpu.pipeline_mode<synchronous>, transform_indices = @transform_3, window_bounds = array<i64: 4, 192, 384>}, {pipeline_mode = #tpu.pipeline_mode<synchronous>, transform_indices = @transform_4, window_bounds = array<i64: 4, 1, 384>}, {pipeline_mode = #tpu.pipeline_mode<synchronous>, transform_indices = @transform_5, window_bounds = array<i64: 4, 384, 192>}, {pipeline_mode = #tpu.pipeline_mode<synchronous>, transform_indices = @transform_6, window_bounds = array<i64: 4, 1, 192>}, {pipeline_mode = #tpu.pipeline_mode<synchronous>, transform_indices = @transform_7, window_bounds = array<i64: 192, 128>}, {pipeline_mode = #tpu.pipeline_mode<synchronous>, transform_indices = @transform_8, window_bounds = array<i64: 1, 128>}, {transform_indices = @transform_9, window_bounds = array<i64: 16, 128>}]} {
    %c0 = arith.constant 0 : index
    %c0_0 = arith.constant 0 : index
    %0 = vector.load %arg1[%c0, %c0_0] : memref<16x16xbf16, #tpu.memory_space<vmem>>, vector<16x16xbf16>
    %c0_1 = arith.constant 0 : index
    %c0_2 = arith.constant 0 : index
    %1 = vector.load %arg2[%c0_1, %c0_2] : memref<16x192xbf16, #tpu.memory_space<vmem>>, vector<16x192xbf16>
    %cst = arith.constant dense<0.000000e+00> : vector<16x192xf32>
    %2 = tpu.matmul %0, %1, %cst {dimension_numbers = #tpu.dot_dimension_numbers<[1], [0], [0], [1], [0, 0, 1, 1], [], []>} : vector<16x16xbf16>, vector<16x192xbf16>, vector<16x192xf32> -> vector<16x192xf32>
    %c0_3 = arith.constant 0 : index
    %c0_4 = arith.constant 0 : index
    %3 = vector.load %arg3[%c0_3, %c0_4] : memref<1x192xf32, #tpu.memory_space<vmem>>, vector<1x192xf32>
    %4 = vector.broadcast %3 : vector<1x192xf32> to vector<16x192xf32>
    %5 = arith.addf %2, %4 : vector<16x192xf32>
    %6 = arith.truncf %5 : vector<16x192xf32> to vector<16x192xbf16>
    %c0_5 = arith.constant 0 : index
    %c0_6 = arith.constant 0 : index
    %c0_7 = arith.constant 0 : index
    %7 = vector.load %arg4[%c0_5, %c0_6, %c0_7] : memref<4x192x384xbf16, #tpu.memory_space<vmem>>, vector<1x192x384xbf16>
    %8 = vector.shape_cast %7 : vector<1x192x384xbf16> to vector<192x384xbf16>
    %cst_8 = arith.constant dense<0.000000e+00> : vector<16x384xf32>
    %9 = tpu.matmul %6, %8, %cst_8 {dimension_numbers = #tpu.dot_dimension_numbers<[1], [0], [0], [1], [0, 0, 1, 1], [], []>} : vector<16x192xbf16>, vector<192x384xbf16>, vector<16x384xf32> -> vector<16x384xf32>
    %c0_9 = arith.constant 0 : index
    %c0_10 = arith.constant 0 : index
    %c0_11 = arith.constant 0 : index
    %10 = vector.load %arg5[%c0_9, %c0_10, %c0_11] : memref<4x1x384xf32, #tpu.memory_space<vmem>>, vector<1x1x384xf32>
    %11 = vector.shape_cast %10 : vector<1x1x384xf32> to vector<1x384xf32>
    %12 = vector.broadcast %11 : vector<1x384xf32> to vector<16x384xf32>
    %13 = arith.addf %9, %12 : vector<16x384xf32>
    %cst_12 = arith.constant 0.000000e+00 : f32
    %14 = vector.broadcast %cst_12 : f32 to vector<16x384xf32>
    %15 = arith.maximumf %13, %14 : vector<16x384xf32>
    %16 = arith.truncf %15 : vector<16x384xf32> to vector<16x384xbf16>
    %c0_13 = arith.constant 0 : index
    %c0_14 = arith.constant 0 : index
    %c0_15 = arith.constant 0 : index
    %17 = vector.load %arg6[%c0_13, %c0_14, %c0_15] : memref<4x384x192xbf16, #tpu.memory_space<vmem>>, vector<1x384x192xbf16>
    %18 = vector.shape_cast %17 : vector<1x384x192xbf16> to vector<384x192xbf16>
    %cst_16 = arith.constant dense<0.000000e+00> : vector<16x192xf32>
    %19 = tpu.matmul %16, %18, %cst_16 {dimension_numbers = #tpu.dot_dimension_numbers<[1], [0], [0], [1], [0, 0, 1, 1], [], []>} : vector<16x384xbf16>, vector<384x192xbf16>, vector<16x192xf32> -> vector<16x192xf32>
    %c0_17 = arith.constant 0 : index
    %c0_18 = arith.constant 0 : index
    %c0_19 = arith.constant 0 : index
    %20 = vector.load %arg7[%c0_17, %c0_18, %c0_19] : memref<4x1x192xf32, #tpu.memory_space<vmem>>, vector<1x1x192xf32>
    %21 = vector.shape_cast %20 : vector<1x1x192xf32> to vector<1x192xf32>
    %22 = vector.broadcast %21 : vector<1x192xf32> to vector<16x192xf32>
    %23 = arith.addf %19, %22 : vector<16x192xf32>
    %24 = arith.addf %5, %23 : vector<16x192xf32>
    %25 = arith.truncf %24 : vector<16x192xf32> to vector<16x192xbf16>
    %c1 = arith.constant 1 : index
    %c0_20 = arith.constant 0 : index
    %c0_21 = arith.constant 0 : index
    %26 = vector.load %arg4[%c1, %c0_20, %c0_21] : memref<4x192x384xbf16, #tpu.memory_space<vmem>>, vector<1x192x384xbf16>
    %27 = vector.shape_cast %26 : vector<1x192x384xbf16> to vector<192x384xbf16>
    %cst_22 = arith.constant dense<0.000000e+00> : vector<16x384xf32>
    %28 = tpu.matmul %25, %27, %cst_22 {dimension_numbers = #tpu.dot_dimension_numbers<[1], [0], [0], [1], [0, 0, 1, 1], [], []>} : vector<16x192xbf16>, vector<192x384xbf16>, vector<16x384xf32> -> vector<16x384xf32>
    %c1_23 = arith.constant 1 : index
    %c0_24 = arith.constant 0 : index
    %c0_25 = arith.constant 0 : index
    %29 = vector.load %arg5[%c1_23, %c0_24, %c0_25] : memref<4x1x384xf32, #tpu.memory_space<vmem>>, vector<1x1x384xf32>
    %30 = vector.shape_cast %29 : vector<1x1x384xf32> to vector<1x384xf32>
    %31 = vector.broadcast %30 : vector<1x384xf32> to vector<16x384xf32>
    %32 = arith.addf %28, %31 : vector<16x384xf32>
    %cst_26 = arith.constant 0.000000e+00 : f32
    %33 = vector.broadcast %cst_26 : f32 to vector<16x384xf32>
    %34 = arith.maximumf %32, %33 : vector<16x384xf32>
    %35 = arith.truncf %34 : vector<16x384xf32> to vector<16x384xbf16>
    %c1_27 = arith.constant 1 : index
    %c0_28 = arith.constant 0 : index
    %c0_29 = arith.constant 0 : index
    %36 = vector.load %arg6[%c1_27, %c0_28, %c0_29] : memref<4x384x192xbf16, #tpu.memory_space<vmem>>, vector<1x384x192xbf16>
    %37 = vector.shape_cast %36 : vector<1x384x192xbf16> to vector<384x192xbf16>
    %cst_30 = arith.constant dense<0.000000e+00> : vector<16x192xf32>
    %38 = tpu.matmul %35, %37, %cst_30 {dimension_numbers = #tpu.dot_dimension_numbers<[1], [0], [0], [1], [0, 0, 1, 1], [], []>} : vector<16x384xbf16>, vector<384x192xbf16>, vector<16x192xf32> -> vector<16x192xf32>
    %c1_31 = arith.constant 1 : index
    %c0_32 = arith.constant 0 : index
    %c0_33 = arith.constant 0 : index
    %39 = vector.load %arg7[%c1_31, %c0_32, %c0_33] : memref<4x1x192xf32, #tpu.memory_space<vmem>>, vector<1x1x192xf32>
    %40 = vector.shape_cast %39 : vector<1x1x192xf32> to vector<1x192xf32>
    %41 = vector.broadcast %40 : vector<1x192xf32> to vector<16x192xf32>
    %42 = arith.addf %38, %41 : vector<16x192xf32>
    %43 = arith.addf %24, %42 : vector<16x192xf32>
    %44 = arith.truncf %43 : vector<16x192xf32> to vector<16x192xbf16>
    %c2 = arith.constant 2 : index
    %c0_34 = arith.constant 0 : index
    %c0_35 = arith.constant 0 : index
    %45 = vector.load %arg4[%c2, %c0_34, %c0_35] : memref<4x192x384xbf16, #tpu.memory_space<vmem>>, vector<1x192x384xbf16>
    %46 = vector.shape_cast %45 : vector<1x192x384xbf16> to vector<192x384xbf16>
    %cst_36 = arith.constant dense<0.000000e+00> : vector<16x384xf32>
    %47 = tpu.matmul %44, %46, %cst_36 {dimension_numbers = #tpu.dot_dimension_numbers<[1], [0], [0], [1], [0, 0, 1, 1], [], []>} : vector<16x192xbf16>, vector<192x384xbf16>, vector<16x384xf32> -> vector<16x384xf32>
    %c2_37 = arith.constant 2 : index
    %c0_38 = arith.constant 0 : index
    %c0_39 = arith.constant 0 : index
    %48 = vector.load %arg5[%c2_37, %c0_38, %c0_39] : memref<4x1x384xf32, #tpu.memory_space<vmem>>, vector<1x1x384xf32>
    %49 = vector.shape_cast %48 : vector<1x1x384xf32> to vector<1x384xf32>
    %50 = vector.broadcast %49 : vector<1x384xf32> to vector<16x384xf32>
    %51 = arith.addf %47, %50 : vector<16x384xf32>
    %cst_40 = arith.constant 0.000000e+00 : f32
    %52 = vector.broadcast %cst_40 : f32 to vector<16x384xf32>
    %53 = arith.maximumf %51, %52 : vector<16x384xf32>
    %54 = arith.truncf %53 : vector<16x384xf32> to vector<16x384xbf16>
    %c2_41 = arith.constant 2 : index
    %c0_42 = arith.constant 0 : index
    %c0_43 = arith.constant 0 : index
    %55 = vector.load %arg6[%c2_41, %c0_42, %c0_43] : memref<4x384x192xbf16, #tpu.memory_space<vmem>>, vector<1x384x192xbf16>
    %56 = vector.shape_cast %55 : vector<1x384x192xbf16> to vector<384x192xbf16>
    %cst_44 = arith.constant dense<0.000000e+00> : vector<16x192xf32>
    %57 = tpu.matmul %54, %56, %cst_44 {dimension_numbers = #tpu.dot_dimension_numbers<[1], [0], [0], [1], [0, 0, 1, 1], [], []>} : vector<16x384xbf16>, vector<384x192xbf16>, vector<16x192xf32> -> vector<16x192xf32>
    %c2_45 = arith.constant 2 : index
    %c0_46 = arith.constant 0 : index
    %c0_47 = arith.constant 0 : index
    %58 = vector.load %arg7[%c2_45, %c0_46, %c0_47] : memref<4x1x192xf32, #tpu.memory_space<vmem>>, vector<1x1x192xf32>
    %59 = vector.shape_cast %58 : vector<1x1x192xf32> to vector<1x192xf32>
    %60 = vector.broadcast %59 : vector<1x192xf32> to vector<16x192xf32>
    %61 = arith.addf %57, %60 : vector<16x192xf32>
    %62 = arith.addf %43, %61 : vector<16x192xf32>
    %63 = arith.truncf %62 : vector<16x192xf32> to vector<16x192xbf16>
    %c3 = arith.constant 3 : index
    %c0_48 = arith.constant 0 : index
    %c0_49 = arith.constant 0 : index
    %64 = vector.load %arg4[%c3, %c0_48, %c0_49] : memref<4x192x384xbf16, #tpu.memory_space<vmem>>, vector<1x192x384xbf16>
    %65 = vector.shape_cast %64 : vector<1x192x384xbf16> to vector<192x384xbf16>
    %cst_50 = arith.constant dense<0.000000e+00> : vector<16x384xf32>
    %66 = tpu.matmul %63, %65, %cst_50 {dimension_numbers = #tpu.dot_dimension_numbers<[1], [0], [0], [1], [0, 0, 1, 1], [], []>} : vector<16x192xbf16>, vector<192x384xbf16>, vector<16x384xf32> -> vector<16x384xf32>
    %c3_51 = arith.constant 3 : index
    %c0_52 = arith.constant 0 : index
    %c0_53 = arith.constant 0 : index
    %67 = vector.load %arg5[%c3_51, %c0_52, %c0_53] : memref<4x1x384xf32, #tpu.memory_space<vmem>>, vector<1x1x384xf32>
    %68 = vector.shape_cast %67 : vector<1x1x384xf32> to vector<1x384xf32>
    %69 = vector.broadcast %68 : vector<1x384xf32> to vector<16x384xf32>
    %70 = arith.addf %66, %69 : vector<16x384xf32>
    %cst_54 = arith.constant 0.000000e+00 : f32
    %71 = vector.broadcast %cst_54 : f32 to vector<16x384xf32>
    %72 = arith.maximumf %70, %71 : vector<16x384xf32>
    %73 = arith.truncf %72 : vector<16x384xf32> to vector<16x384xbf16>
    %c3_55 = arith.constant 3 : index
    %c0_56 = arith.constant 0 : index
    %c0_57 = arith.constant 0 : index
    %74 = vector.load %arg6[%c3_55, %c0_56, %c0_57] : memref<4x384x192xbf16, #tpu.memory_space<vmem>>, vector<1x384x192xbf16>
    %75 = vector.shape_cast %74 : vector<1x384x192xbf16> to vector<384x192xbf16>
    %cst_58 = arith.constant dense<0.000000e+00> : vector<16x192xf32>
    %76 = tpu.matmul %73, %75, %cst_58 {dimension_numbers = #tpu.dot_dimension_numbers<[1], [0], [0], [1], [0, 0, 1, 1], [], []>} : vector<16x384xbf16>, vector<384x192xbf16>, vector<16x192xf32> -> vector<16x192xf32>
    %c3_59 = arith.constant 3 : index
    %c0_60 = arith.constant 0 : index
    %c0_61 = arith.constant 0 : index
    %77 = vector.load %arg7[%c3_59, %c0_60, %c0_61] : memref<4x1x192xf32, #tpu.memory_space<vmem>>, vector<1x1x192xf32>
    %78 = vector.shape_cast %77 : vector<1x1x192xf32> to vector<1x192xf32>
    %79 = vector.broadcast %78 : vector<1x192xf32> to vector<16x192xf32>
    %80 = arith.addf %76, %79 : vector<16x192xf32>
    %81 = arith.addf %62, %80 : vector<16x192xf32>
    %82 = arith.truncf %81 : vector<16x192xf32> to vector<16x192xbf16>
    %c0_62 = arith.constant 0 : index
    %c0_63 = arith.constant 0 : index
    %83 = vector.load %arg8[%c0_62, %c0_63] : memref<192x128xbf16, #tpu.memory_space<vmem>>, vector<192x128xbf16>
    %cst_64 = arith.constant dense<0.000000e+00> : vector<16x128xf32>
    %84 = tpu.matmul %82, %83, %cst_64 {dimension_numbers = #tpu.dot_dimension_numbers<[1], [0], [0], [1], [0, 0, 1, 1], [], []>} : vector<16x192xbf16>, vector<192x128xbf16>, vector<16x128xf32> -> vector<16x128xf32>
    %c0_65 = arith.constant 0 : index
    %c0_66 = arith.constant 0 : index
    %85 = vector.load %arg9[%c0_65, %c0_66] : memref<1x128xf32, #tpu.memory_space<vmem>>, vector<1x128xf32>
    %86 = vector.broadcast %85 : vector<1x128xf32> to vector<16x128xf32>
    %87 = arith.addf %84, %86 : vector<16x128xf32>
    %88 = arith.negf %87 : vector<16x128xf32>
    %89 = math.exp %88 : vector<16x128xf32>
    %cst_67 = arith.constant 1.000000e+00 : f32
    %90 = vector.broadcast %cst_67 : f32 to vector<16x128xf32>
    %91 = arith.addf %90, %89 : vector<16x128xf32>
    %92 = arith.divf %90, %91 : vector<16x128xf32>
    %93 = arith.truncf %92 : vector<16x128xf32> to vector<16x128xbf16>
    %c0_68 = arith.constant 0 : index
    %c0_69 = arith.constant 0 : index
    %94 = vector.load %arg10[%c0_68, %c0_69] : memref<16x128xbf16, #tpu.memory_space<vmem>>, vector<16x128xbf16>
    tpu.vector_store %arg10[%c0_68, %c0_69], %93 {strides = array<i32>} : memref<16x128xbf16, #tpu.memory_space<vmem>>, vector<16x128xbf16>,
    return
  }
  func.func @transform_0(%arg0: i32) -> (i32, i32) {
    %c0_i32 = arith.constant 0 : i32
    %c0_i32_0 = arith.constant 0 : i32
    return %arg0, %c0_i32 : i32, i32
  }
  func.func @transform_1(%arg0: i32) -> (i32, i32) {
    %c0_i32 = arith.constant 0 : i32
    %c0_i32_0 = arith.constant 0 : i32
    %c0_i32_1 = arith.constant 0 : i32
    return %c0_i32, %c0_i32_0 : i32, i32
  }
  func.func @transform_2(%arg0: i32) -> (i32, i32) {
    %c0_i32 = arith.constant 0 : i32
    %c0_i32_0 = arith.constant 0 : i32
    %c0_i32_1 = arith.constant 0 : i32
    return %c0_i32, %c0_i32_0 : i32, i32
  }
  func.func @transform_3(%arg0: i32) -> (i32, i32, i32) {
    %c0_i32 = arith.constant 0 : i32
    %c0_i32_0 = arith.constant 0 : i32
    %c0_i32_1 = arith.constant 0 : i32
    %c0_i32_2 = arith.constant 0 : i32
    return %c0_i32, %c0_i32_0, %c0_i32_1 : i32, i32, i32
  }
  func.func @transform_4(%arg0: i32) -> (i32, i32, i32) {
    %c0_i32 = arith.constant 0 : i32
    %c0_i32_0 = arith.constant 0 : i32
    %c0_i32_1 = arith.constant 0 : i32
    %c0_i32_2 = arith.constant 0 : i32
    return %c0_i32, %c0_i32_0, %c0_i32_1 : i32, i32, i32
  }
  func.func @transform_5(%arg0: i32) -> (i32, i32, i32) {
    %c0_i32 = arith.constant 0 : i32
    %c0_i32_0 = arith.constant 0 : i32
    %c0_i32_1 = arith.constant 0 : i32
    %c0_i32_2 = arith.constant 0 : i32
    return %c0_i32, %c0_i32_0, %c0_i32_1 : i32, i32, i32
  }
  func.func @transform_6(%arg0: i32) -> (i32, i32, i32) {
    %c0_i32 = arith.constant 0 : i32
    %c0_i32_0 = arith.constant 0 : i32
    %c0_i32_1 = arith.constant 0 : i32
    %c0_i32_2 = arith.constant 0 : i32
    return %c0_i32, %c0_i32_0, %c0_i32_1 : i32, i32, i32
  }
  func.func @transform_7(%arg0: i32) -> (i32, i32) {
    %c0_i32 = arith.constant 0 : i32
    %c0_i32_0 = arith.constant 0 : i32
    %c0_i32_1 = arith.constant 0 : i32
    return %c0_i32, %c0_i32_0 : i32, i32
  }
  func.func @transform_8(%arg0: i32) -> (i32, i32) {
    %c0_i32 = arith.constant 0 : i32
    %c0_i32_0 = arith.constant 0 : i32
    %c0_i32_1 = arith.constant 0 : i32
    return %c0_i32, %c0_i32_0 : i32, i32
  }
  func.func @transform_9(%arg0: i32) -> (i32, i32) {
    %c0_i32 = arith.constant 0 : i32
    %c0_i32_0 = arith.constant 0 : i32
    return %arg0, %c0_i32 : i32, i32
  }
}

</mosaic_0001>

<bundles_post_ra>
// kernel: _ehr_forward_impl.1
= control target key start
LH: loop header
LB: loop body
LE: loop exit
PB: predicated region body
PF: predicated region fallthrough
CT: control target
= control target key end

     0   :  { %v4483_v1 = vmov 0   ;;  %vm64_vm0 = vcmask 130048   ;;  %v39_v42 = vlaneseq  ;;  %vm370_vm1 = vcmask 523264   ;;  %s5791_s1 = inlined_call_operand.vmem [shape: bf16[16,192], index: 1, kind: input, shape index: {}]   ;;  %s5792_s0 = inlined_call_operand.vmem [shape: bf16[16,16], index: 0, kind: input, shape index: {}]   ;;  %s5793_s3 = inlined_call_operand.vmem [shape: bf16[4,192,384], index: 3, kind: input, shape index: {}]   ;;  %s5794_s5 = inlined_call_operand.vmem [shape: bf16[4,384,192], index: 5, kind: input, shape index: {}]   ;;  %s5795_s2 = inlined_call_operand.vmem [shape: f32[1,192], index: 2, kind: input, shape index: {}]   ;;  %s5796_s4 = inlined_call_operand.vmem [shape: f32[4,1,384], index: 4, kind: input, shape index: {}]   ;;  %s5797_s6 = inlined_call_operand.vmem [shape: f32[4,1,192], index: 6, kind: input, shape index: {}]   ;;  %s5798_s7 = inlined_call_operand.vmem [shape: bf16[192,128], index: 7, kind: input, shape index: {}]   ;;  %s5799_s8 = inlined_call_operand.vmem [shape: f32[1,128], index: 8, kind: input, shape index: {}]   ;;  %s5800_s9 = inlined_call_operand.vmem [shape: bf16[16,128], index: 9, kind: output, shape index: {}]  }
   0x1   :  { %v3979_v0 = vld [vmem:[%s5791_s1 + $0x4] ss:$8 sps:$4 sm:$0xff]   ;;  %100 = vmatprep.mubr.bf16.mxu1 %v4483_v1  ;;  %417 = vmatprep.subr.bf16.mxu0 %v4483_v1  ;;  %v3981_v2 = vld [vmem:[%s5791_s1] ss:$8 sps:$4 sm:$0xff]   ;;  %v3991_v12 = vld [vmem:[%s5793_s3 + $0x30] ss:$12 sps:$4 sm:$0xff]  }
   0x2   :  { %68 = vmatprep.subr.bf16.mxu1 %v3979_v0  ;;  %v3982_v3 = vld [vmem:[%s5792_s0] sm:$0xff]   ;;  %v3986_v6 = vld [vmem:[%s5793_s3 + $0x8] ss:$12 sps:$4 sm:$0xff]   ;;  %v3997_v13 = vld [vmem:[%s5793_s3 + $0x4c] ss:$12 sps:$4 sm:$0xff]   ;;  %v4670_v43 = vshrl.u32 %v39_v42, 7 }
   0x3   :  { %69 = vmatpush1.bf16.msra.mxu1 %v3981_v2  ;;  %v3983_v4 = vld [vmem:[%s5793_s3] ss:$12 sps:$4 sm:$0xff]   ;;  %v3985_v5 = vld [vmem:[%s5793_s3 + $0x4] ss:$12 sps:$4 sm:$0xff]   ;;  %v3989_v7 = vld [vmem:[%s5793_s3 + $0x1c] ss:$12 sps:$4 sm:$0xff]   ;;  %418 = vmatpush1.bf16.msra.mxu0 %v3986_v6 }
   0x4   :  { %374 = vmatprep.subr.bf16.mxu1 %v3985_v5  ;;  %v3990_v8 = vld [vmem:[%s5793_s3 + $0x20] ss:$12 sps:$4 sm:$0xff]   ;;  %v3987_v9 = vld [vmem:[%s5793_s3 + $0x18] ss:$12 sps:$4 sm:$0xff]   ;;  %419 = vmatprep.subr.bf16.mxu0 %v4483_v1  ;;  %v3998_v14 = vld [vmem:[%s5793_s3 + $0x50] ss:$12 sps:$4 sm:$0xff]  }
   0x5   :  { %v3993_v10 = vld [vmem:[%s5793_s3 + $0x34] ss:$12 sps:$4 sm:$0xff]   ;;  %v3994_v11 = vld [vmem:[%s5793_s3 + $0x38] ss:$12 sps:$4 sm:$0xff]   ;;  %v4005_v19 = vld [vmem:[%s5793_s3 + $0x7c] ss:$12 sps:$4 sm:$0xff]  }
   0x6   :  { %3282 = vmatmul.mubr.msk.bf16.vlgmr.msra.gmra.mrb[0].mxu1 %vm64_vm0, %v3982_v3  ;;  %v3995_v15 = vld [vmem:[%s5793_s3 + $0x48] ss:$12 sps:$4 sm:$0xff]   ;;  %v4001_v16 = vld [vmem:[%s5793_s3 + $0x64] ss:$12 sps:$4 sm:$0xff]   ;;  %v3999_v18 = vld [vmem:[%s5793_s3 + $0x60] ss:$12 sps:$4 sm:$0xff]  }
   0x7   :  { %375 = vmatpush1.bf16.msra.mxu1 %v3983_v4  ;;  %420 = vmatpush1.bf16.msra.mxu0 %v3990_v8  ;;  %v4002_v17 = vld [vmem:[%s5793_s3 + $0x68] ss:$12 sps:$4 sm:$0xff]   ;;  %v4006_v20 = vld [vmem:[%s5793_s3 + $0x80] ss:$12 sps:$4 sm:$0xff]   ;;  %v4003_v21 = vld [vmem:[%s5793_s3 + $0x78] ss:$12 sps:$4 sm:$0xff]  }
   0x8   :  { %376 = vmatprep.subr.bf16.mxu1 %v3989_v7  ;;  %421 = vmatprep.subr.bf16.mxu0 %v4483_v1  ;;  %v4009_v22 = vld [vmem:[%s5793_s3 + $0x94] ss:$12 sps:$4 sm:$0xff]   ;;  %v4007_v23 = vld [vmem:[%s5793_s3 + $0x90] ss:$12 sps:$4 sm:$0xff]   ;;  %v4010_v24 = vld [vmem:[%s5793_s3 + $0x98] ss:$12 sps:$4 sm:$0xff]  }
   0x9   :  { %v4013_v25 = vld [vmem:[%s5793_s3 + $0xac] ss:$12 sps:$4 sm:$0xff]   ;;  %v4014_v26 = vld [vmem:[%s5793_s3 + $0xb0] ss:$12 sps:$4 sm:$0xff]   ;;  %v4011_v27 = vld [vmem:[%s5793_s3 + $0xa8] ss:$12 sps:$4 sm:$0xff]  }
   0xa   :  { %v4017_v28 = vld [vmem:[%s5793_s3 + $0xc4] ss:$12 sps:$4 sm:$0xff]   ;;  %v4018_v29 = vld [vmem:[%s5793_s3 + $0xc8] ss:$12 sps:$4 sm:$0xff]   ;;  %v4015_v30 = vld [vmem:[%s5793_s3 + $0xc0] ss:$12 sps:$4 sm:$0xff]  }
   0xb   :  { %377 = vmatpush1.bf16.msra.mxu1 %v3987_v9  ;;  %422 = vmatpush1.bf16.msra.mxu0 %v3994_v11  ;;  %v4021_v31 = vld [vmem:[%s5793_s3 + $0xdc] ss:$12 sps:$4 sm:$0xff]   ;;  %v4022_v32 = vld [vmem:[%s5793_s3 + $0xe0] ss:$12 sps:$4 sm:$0xff]   ;;  %v4019_v33 = vld [vmem:[%s5793_s3 + $0xd8] ss:$12 sps:$4 sm:$0xff]  }
   0xc   :  { %378 = vmatprep.subr.bf16.mxu1 %v3993_v10  ;;  %423 = vmatprep.subr.bf16.mxu0 %v4483_v1  ;;  %v4025_v34 = vld [vmem:[%s5793_s3 + $0xf4] ss:$12 sps:$4 sm:$0xff]   ;;  %v4023_v35 = vld [vmem:[%s5793_s3 + $0xf0] ss:$12 sps:$4 sm:$0xff]   ;;  %v4026_v36 = vld [vmem:[%s5793_s3 + $0xf8] ss:$12 sps:$4 sm:$0xff]  }
   0xd   :  { %v4029_v37 = vld [vmem:[%s5793_s3 + $0x10c] ss:$12 sps:$4 sm:$0xff]   ;;  %v4027_v38 = vld [vmem:[%s5793_s3 + $0x108] ss:$12 sps:$4 sm:$0xff]   ;;  %v4030_v39 = vld [vmem:[%s5793_s3 + $0x110] ss:$12 sps:$4 sm:$0xff]  }
   0xe   :  { %v4033_v40 = vld [vmem:[%s5794_s5 + $0x4] ss:$8 sps:$4 sm:$0xff]   ;;  %v4673_v44 = vsub.s32 1, %v4670_v43  ;;  %v37_v45 = vld [vmem:[%s5795_s2] sm:$0x3]  ;;  %v4679_v46 = vsub.s32 0, %v4670_v43 }
   0xf   :  { %379 = vmatpush1.bf16.msra.mxu1 %v3991_v12  ;;  %424 = vmatpush1.bf16.msra.mxu0 %v3998_v14  ;;  %v4057_v41 = vld [vmem:[%s5794_s5 + $0x104] ss:$8 sps:$4 sm:$0xff]   ;;  %v4031_v58 = vld [vmem:[%s5794_s5] ss:$8 sps:$4 sm:$0xff]   ;;  %v4036_v61 = vld [vmem:[%s5794_s5 + $0x14] ss:$8 sps:$4 sm:$0xff]  }
  0x10   :  { %380 = vmatprep.subr.bf16.mxu1 %v3997_v13  ;;  %425 = vmatprep.subr.bf16.mxu0 %v4483_v1  ;;  %v46_v48 = vrot.slane %v37_v45, %v4673_v44  ;;  %v42_v49 = vrot.slane %v37_v45, %v4679_v46  ;;  %v4055_v59 = vld [vmem:[%s5794_s5 + $0x100] ss:$8 sps:$4 sm:$0xff]   ;;  %v4063_v62 = vld [vmem:[%s5794_s5 + $0x114] ss:$8 sps:$4 sm:$0xff]   ;;  %v4034_v63 = vld [vmem:[%s5794_s5 + $0x10] ss:$8 sps:$4 sm:$0xff]  }
  0x11   :  { %v4061_v0 = vld [vmem:[%s5794_s5 + $0x110] ss:$8 sps:$4 sm:$0xff]   ;;  %v4039_v2 = vld [vmem:[%s5794_s5 + $0x24] ss:$8 sps:$4 sm:$0xff]   ;;  %v4037_v4 = vld [vmem:[%s5794_s5 + $0x20] ss:$8 sps:$4 sm:$0xff]  }
  0x12   :  { %v4069_v3 = vld [vmem:[%s5794_s5 + $0x124] ss:$8 sps:$4 sm:$0xff]   ;;  %v4067_v5 = vld [vmem:[%s5794_s5 + $0x120] ss:$8 sps:$4 sm:$0xff]   ;;  %v4042_v6 = vld [vmem:[%s5794_s5 + $0x34] ss:$8 sps:$4 sm:$0xff]  }
  0x13   :  { %381 = vmatpush1.bf16.msra.mxu1 %v3995_v15  ;;  %426 = vmatpush1.bf16.msra.mxu0 %v4002_v17  ;;  %v4075_v7 = vld [vmem:[%s5794_s5 + $0x134] ss:$8 sps:$4 sm:$0xff]   ;;  %v4040_v8 = vld [vmem:[%s5794_s5 + $0x30] ss:$8 sps:$4 sm:$0xff]   ;;  %v4045_v10 = vld [vmem:[%s5794_s5 + $0x44] ss:$8 sps:$4 sm:$0xff]  }
  0x14   :  { %382 = vmatprep.subr.bf16.mxu1 %v4001_v16  ;;  %427 = vmatprep.subr.bf16.mxu0 %v4483_v1  ;;  %v4073_v9 = vld [vmem:[%s5794_s5 + $0x130] ss:$8 sps:$4 sm:$0xff]   ;;  %v4081_v11 = vld [vmem:[%s5794_s5 + $0x144] ss:$8 sps:$4 sm:$0xff]   ;;  %v4043_v12 = vld [vmem:[%s5794_s5 + $0x40] ss:$8 sps:$4 sm:$0xff]  }
  0x15   :  { %v4079_v13 = vld [vmem:[%s5794_s5 + $0x140] ss:$8 sps:$4 sm:$0xff]   ;;  %v4048_v14 = vld [vmem:[%s5794_s5 + $0x54] ss:$8 sps:$4 sm:$0xff]   ;;  %v4046_v16 = vld [vmem:[%s5794_s5 + $0x50] ss:$8 sps:$4 sm:$0xff]  }
  0x16   :  { %v4087_v15 = vld [vmem:[%s5794_s5 + $0x154] ss:$8 sps:$4 sm:$0xff]   ;;  %v4085_v17 = vld [vmem:[%s5794_s5 + $0x150] ss:$8 sps:$4 sm:$0xff]   ;;  %v4840_v45 = vsub.s32 2, %v4670_v43 }
  0x17   :  { %383 = vmatpush1.bf16.msra.mxu1 %v3999_v18  ;;  %428 = vmatpush1.bf16.msra.mxu0 %v4006_v20  ;;  %v4051_v18 = vld [vmem:[%s5794_s5 + $0x64] ss:$8 sps:$4 sm:$0xff]   ;;  %v4054_v20 = vld [vmem:[%s5794_s5 + $0x74] ss:$8 sps:$4 sm:$0xff]  }
  0x18   :  { %384 = vmatprep.subr.bf16.mxu1 %v4005_v19  ;;  %429 = vmatprep.subr.bf16.mxu0 %v4483_v1  ;;  %v4049_v19 = vld [vmem:[%s5794_s5 + $0x60] ss:$8 sps:$4 sm:$0xff]   ;;  %v4105_v42 = vld [vmem:[%s5793_s3 + $0x124] ss:$12 sps:$4 sm:$0xff]  }
  0x1b   :  { %385 = vmatpush1.bf16.msra.mxu1 %v4003_v21  ;;  %430 = vmatpush1.bf16.msra.mxu0 %v4010_v24  ;;  %v4052_v21 = vld [vmem:[%s5794_s5 + $0x70] ss:$8 sps:$4 sm:$0xff]   ;;  %v4066_v24 = vld [vmem:[%s5794_s5 + $0x94] ss:$8 sps:$4 sm:$0xff]  }
  0x1c   :  { %386 = vmatprep.subr.bf16.mxu1 %v4009_v22  ;;  %431 = vmatprep.subr.bf16.mxu0 %v4483_v1  ;;  %v4060_v22 = vld [vmem:[%s5794_s5 + $0x84] ss:$8 sps:$4 sm:$0xff]  }
  0x1f   :  { %387 = vmatpush1.bf16.msra.mxu1 %v4007_v23  ;;  %432 = vmatpush1.bf16.msra.mxu0 %v4014_v26  ;;  %v4058_v23 = vld [vmem:[%s5794_s5 + $0x80] ss:$8 sps:$4 sm:$0xff]   ;;  %v4072_v26 = vld [vmem:[%s5794_s5 + $0xa4] ss:$8 sps:$4 sm:$0xff]  }
  0x20   :  { %388 = vmatprep.subr.bf16.mxu1 %v4013_v25  ;;  %433 = vmatprep.subr.bf16.mxu0 %v4483_v1  ;;  %v4064_v25 = vld [vmem:[%s5794_s5 + $0x90] ss:$8 sps:$4 sm:$0xff]  }
  0x23   :  { %389 = vmatpush1.bf16.msra.mxu1 %v4011_v27  ;;  %434 = vmatpush1.bf16.msra.mxu0 %v4018_v29  ;;  %v4070_v27 = vld [vmem:[%s5794_s5 + $0xa0] ss:$8 sps:$4 sm:$0xff]   ;;  %v4076_v29 = vld [vmem:[%s5794_s5 + $0xb0] ss:$8 sps:$4 sm:$0xff]  }
  0x24   :  { %390 = vmatprep.subr.bf16.mxu1 %v4017_v28  ;;  %435 = vmatprep.subr.bf16.mxu0 %v4483_v1  ;;  %v4078_v28 = vld [vmem:[%s5794_s5 + $0xb4] ss:$8 sps:$4 sm:$0xff]  }
  0x27   :  { %391 = vmatpush1.bf16.msra.mxu1 %v4015_v30  ;;  %436 = vmatpush1.bf16.msra.mxu0 %v4022_v32  ;;  %v4084_v30 = vld [vmem:[%s5794_s5 + $0xc4] ss:$8 sps:$4 sm:$0xff]   ;;  %v4090_v32 = vld [vmem:[%s5794_s5 + $0xd4] ss:$8 sps:$4 sm:$0xff]  }
  0x28   :  { %392 = vmatprep.subr.bf16.mxu1 %v4021_v31  ;;  %437 = vmatprep.subr.bf16.mxu0 %v4483_v1  ;;  %v4082_v31 = vld [vmem:[%s5794_s5 + $0xc0] ss:$8 sps:$4 sm:$0xff]  }
  0x2b   :  { %393 = vmatpush1.bf16.msra.mxu1 %v4019_v33  ;;  %438 = vmatpush1.bf16.msra.mxu0 %v4026_v36  ;;  %v4088_v33 = vld [vmem:[%s5794_s5 + $0xd0] ss:$8 sps:$4 sm:$0xff]   ;;  %v4096_v36 = vld [vmem:[%s5794_s5 + $0xe4] ss:$8 sps:$4 sm:$0xff]  }
  0x2c   :  { %394 = vmatprep.subr.bf16.mxu1 %v4025_v34  ;;  %439 = vmatprep.subr.bf16.mxu0 %v4483_v1  ;;  %v4093_v34 = vld [vmem:[%s5794_s5 + $0x164] ss:$8 sps:$4 sm:$0xff]  }
  0x2f   :  { %395 = vmatpush1.bf16.msra.mxu1 %v4023_v35  ;;  %440 = vmatpush1.bf16.msra.mxu0 %v4030_v39  ;;  %v4091_v35 = vld [vmem:[%s5794_s5 + $0x160] ss:$8 sps:$4 sm:$0xff]   ;;  %v4097_v39 = vld [vmem:[%s5794_s5 + $0x170] ss:$8 sps:$4 sm:$0xff]  }
  0x30   :  { %396 = vmatprep.subr.bf16.mxu1 %v4029_v37  ;;  %810 = vmatprep.subr.bf16.mxu0 %v4057_v41  ;;  %v4094_v37 = vld [vmem:[%s5794_s5 + $0xe0] ss:$8 sps:$4 sm:$0xff]   ;;  %v4100_v41 = vld [vmem:[%s5794_s5 + $0xf0] ss:$8 sps:$4 sm:$0xff]  }
  0x33   :  { %397 = vmatpush1.bf16.msra.mxu1 %v4027_v38  ;;  %v4099_v38 = vld [vmem:[%s5794_s5 + $0x174] ss:$8 sps:$4 sm:$0xff]  }
  0x34   :  { %767 = vmatprep.subr.bf16.mxu1 %v4033_v40  ;;  %v4102_v40 = vld [vmem:[%s5794_s5 + $0xf4] ss:$8 sps:$4 sm:$0xff]  }
  0xd9   :  { %v102_v47 = vpop.f32.mrb[0].mxu1 }
  0xda   :  { %v104_v50 = vpop.f32.mrb[1].mxu1  ;;  %v4689_v56 = vadd.f32 %v102_v47, %v42_v49  ;;  %v161_v47 = vld [vmem:[%s5796_s4] sm:$0x7] }
  0xdb   :  { %v106_v51 = vpop.f32.mrb[2].mxu1  ;;  %v4685_v54 = vadd.f32 %v104_v50, %v46_v48  ;;  %v170_v50 = vrot.slane %v161_v47, %v4673_v44 }
  0xdc   :  { %v4683_v52 = vadd.f32 %v106_v51, %v42_v49  ;;  %v108_v53 = vpop.f32.mrb[3].mxu1  ;;  %v174_v49 = vrot.slane %v161_v47, %v4840_v45 }
  0xdd   :  { %v4687_v55 = vadd.f32 %v108_v53, %v46_v48  ;;  %v166_v48 = vrot.slane %v161_v47, %v4679_v46  ;;  %v4162_v47 = vld [vmem:[%s5794_s5 + $0x1b4] ss:$8 sps:$4 sm:$0xff]  }
  0xde   :  { %v111_v60 = vpack.c.bf16 %v4683_v52, %v4689_v56 }
  0xdf   :  { %v112_v57 = vpack.c.bf16 %v4687_v55, %v4685_v54 }
  0xe1   :  { %3319 = vmatprep.mubr.msk.bf16.mxu1 %vm370_vm1, %v112_v57  ;;  %3320 = vmatprep.mubr.msk.bf16.mxu0 %vm370_vm1, %v112_v57 }
  0xe2   :  { %407 = vmatmul.mubr.bf16.vlgmr.msra.gmra.mrb[4].mxu1 %v111_v60  ;;  %450 = vmatmul.mubr.bf16.vlgmr.msra.gmra.mrb[0].mxu0 %v111_v60 }
  0xe3   :  { %768 = vmatpush1.bf16.msra.mxu1 %v4031_v58  ;;  %811 = vmatpush1.bf16.msra.mxu0 %v4055_v59 }
  0xe4   :  { %769 = vmatprep.subr.bf16.mxu1 %v4036_v61  ;;  %812 = vmatprep.subr.bf16.mxu0 %v4063_v62 }
  0xe5   :  { %842 = vmatprep.mubr.bf16.mxu0 %v4483_v1 }
  0xe7   :  { %770 = vmatpush1.bf16.msra.mxu1 %v4034_v63  ;;  %813 = vmatpush1.bf16.msra.mxu0 %v4061_v0 }
  0xe8   :  { %771 = vmatprep.subr.bf16.mxu1 %v4039_v2  ;;  %814 = vmatprep.subr.bf16.mxu0 %v4069_v3 }
  0xeb   :  { %772 = vmatpush1.bf16.msra.mxu1 %v4037_v4  ;;  %815 = vmatpush1.bf16.msra.mxu0 %v4067_v5 }
  0xec   :  { %773 = vmatprep.subr.bf16.mxu1 %v4042_v6  ;;  %816 = vmatprep.subr.bf16.mxu0 %v4075_v7 }
  0xef   :  { %774 = vmatpush1.bf16.msra.mxu1 %v4040_v8  ;;  %817 = vmatpush1.bf16.msra.mxu0 %v4073_v9 }
  0xf0   :  { %775 = vmatprep.subr.bf16.mxu1 %v4045_v10  ;;  %818 = vmatprep.subr.bf16.mxu0 %v4081_v11  ;;  %v4103_v11 = vld [vmem:[%s5793_s3 + $0x120] ss:$12 sps:$4 sm:$0xff]  }
  0xf3   :  { %776 = vmatpush1.bf16.msra.mxu1 %v4043_v12  ;;  %819 = vmatpush1.bf16.msra.mxu0 %v4079_v13 }
  0xf4   :  { %777 = vmatprep.subr.bf16.mxu1 %v4048_v14  ;;  %820 = vmatprep.subr.bf16.mxu0 %v4087_v15  ;;  %v4108_v14 = vld [vmem:[%s5793_s3 + $0x13c] ss:$12 sps:$4 sm:$0xff]  }
  0xf7   :  { %778 = vmatpush1.bf16.msra.mxu1 %v4046_v16  ;;  %821 = vmatpush1.bf16.msra.mxu0 %v4085_v17  ;;  %v4106_v16 = vld [vmem:[%s5793_s3 + $0x138] ss:$12 sps:$4 sm:$0xff]   ;;  %v4111_v17 = vld [vmem:[%s5793_s3 + $0x154] ss:$12 sps:$4 sm:$0xff]  }
  0xf8   :  { %779 = vmatprep.subr.bf16.mxu1 %v4051_v18  ;;  %822 = vmatprep.subr.bf16.mxu0 %v4093_v34  ;;  %v4109_v18 = vld [vmem:[%s5793_s3 + $0x150] ss:$12 sps:$4 sm:$0xff]  }
  0xf9   :  { %v4133_v34 = vld [vmem:[%s5793_s3 + $0x210] ss:$12 sps:$4 sm:$0xff]  }
  0xfb   :  { %780 = vmatpush1.bf16.msra.mxu1 %v4049_v19  ;;  %823 = vmatpush1.bf16.msra.mxu0 %v4091_v35  ;;  %v4114_v19 = vld [vmem:[%s5793_s3 + $0x16c] ss:$12 sps:$4 sm:$0xff]  }
  0xfc   :  { %781 = vmatprep.subr.bf16.mxu1 %v4054_v20  ;;  %824 = vmatprep.subr.bf16.mxu0 %v4099_v38  ;;  %v4112_v20 = vld [vmem:[%s5793_s3 + $0x168] ss:$12 sps:$4 sm:$0xff]   ;;  %v4138_v35 = vld [vmem:[%s5793_s3 + $0x22c] ss:$12 sps:$4 sm:$0xff]  }
  0xfd   :  { %v4153_v38 = vld [vmem:[%s5794_s5 + $0x184] ss:$8 sps:$4 sm:$0xff]  }
  0xff   :  { %782 = vmatpush1.bf16.msra.mxu1 %v4052_v21  ;;  %825 = vmatpush1.bf16.msra.mxu0 %v4097_v39  ;;  %v4117_v21 = vld [vmem:[%s5793_s3 + $0x184] ss:$12 sps:$4 sm:$0xff]   ;;  %v4156_v39 = vld [vmem:[%s5794_s5 + $0x194] ss:$8 sps:$4 sm:$0xff]  }
 0x100   :  { %783 = vmatprep.subr.bf16.mxu1 %v4060_v22  ;;  %1121 = vmatprep.subr.bf16.mxu0 %v4105_v42  ;;  %v4115_v22 = vld [vmem:[%s5793_s3 + $0x180] ss:$12 sps:$4 sm:$0xff]  }
 0x101   :  { %v4157_v42 = vld [vmem:[%s5794_s5 + $0x1a0] ss:$8 sps:$4 sm:$0xff]  }
 0x103   :  { %784 = vmatpush1.bf16.msra.mxu1 %v4058_v23  ;;  %v4120_v23 = vld [vmem:[%s5793_s3 + $0x19c] ss:$12 sps:$4 sm:$0xff]  }
 0x104   :  { %785 = vmatprep.subr.bf16.mxu1 %v4066_v24  ;;  %v4118_v24 = vld [vmem:[%s5793_s3 + $0x198] ss:$12 sps:$4 sm:$0xff]  }
 0x107   :  { %786 = vmatpush1.bf16.msra.mxu1 %v4064_v25  ;;  %v4123_v25 = vld [vmem:[%s5793_s3 + $0x1b4] ss:$12 sps:$4 sm:$0xff]  }
 0x108   :  { %787 = vmatprep.subr.bf16.mxu1 %v4072_v26  ;;  %v4121_v26 = vld [vmem:[%s5793_s3 + $0x1b0] ss:$12 sps:$4 sm:$0xff]  }
 0x10b   :  { %788 = vmatpush1.bf16.msra.mxu1 %v4070_v27  ;;  %v4126_v27 = vld [vmem:[%s5793_s3 + $0x1cc] ss:$12 sps:$4 sm:$0xff]  }
 0x10c   :  { %789 = vmatprep.subr.bf16.mxu1 %v4078_v28  ;;  %v4124_v28 = vld [vmem:[%s5793_s3 + $0x1c8] ss:$12 sps:$4 sm:$0xff]  }
 0x10f   :  { %790 = vmatpush1.bf16.msra.mxu1 %v4076_v29  ;;  %v4129_v29 = vld [vmem:[%s5793_s3 + $0x1e4] ss:$12 sps:$4 sm:$0xff]  }
 0x110   :  { %791 = vmatprep.subr.bf16.mxu1 %v4084_v30  ;;  %v4127_v30 = vld [vmem:[%s5793_s3 + $0x1e0] ss:$12 sps:$4 sm:$0xff]  }
 0x113   :  { %792 = vmatpush1.bf16.msra.mxu1 %v4082_v31  ;;  %v4132_v31 = vld [vmem:[%s5793_s3 + $0x1fc] ss:$12 sps:$4 sm:$0xff]  }
 0x114   :  { %793 = vmatprep.subr.bf16.mxu1 %v4090_v32  ;;  %v4130_v32 = vld [vmem:[%s5793_s3 + $0x1f8] ss:$12 sps:$4 sm:$0xff]  }
 0x117   :  { %794 = vmatpush1.bf16.msra.mxu1 %v4088_v33  ;;  %v4135_v33 = vld [vmem:[%s5793_s3 + $0x214] ss:$12 sps:$4 sm:$0xff]  }
 0x118   :  { %795 = vmatprep.subr.bf16.mxu1 %v4096_v36  ;;  %v4136_v36 = vld [vmem:[%s5793_s3 + $0x228] ss:$12 sps:$4 sm:$0xff]  }
 0x11b   :  { %796 = vmatpush1.bf16.msra.mxu1 %v4094_v37  ;;  %v4151_v37 = vld [vmem:[%s5794_s5 + $0x180] ss:$8 sps:$4 sm:$0xff]  }
 0x11c   :  { %797 = vmatprep.subr.bf16.mxu1 %v4102_v40  ;;  %v4154_v40 = vld [vmem:[%s5794_s5 + $0x190] ss:$8 sps:$4 sm:$0xff]  }
 0x11f   :  { %798 = vmatpush1.bf16.msra.mxu1 %v4100_v41  ;;  %v4159_v41 = vld [vmem:[%s5794_s5 + $0x1a4] ss:$8 sps:$4 sm:$0xff]  }
 0x120   :  { %1516 = vmatprep.subr.bf16.mxu1 %v4153_v38  ;;  %v4147_v38 = vld [vmem:[%s5793_s3 + $0x1e8] ss:$12 sps:$4 sm:$0xff]  }
 0x1b5   :  { %v408_v51 = vpop.f32.mrb[4].mxu1  ;;  %v451_v53 = vpop.f32.mrb[0].mxu0 }
 0x1b6   :  { %v409_v57 = vadd.f32 %v408_v51, %v166_v48  ;;  %v452_v58 = vadd.f32 %v451_v53, %v174_v49  ;;  %v410_v59 = vpop.f32.mrb[5].mxu1  ;;  %v453_v60 = vpop.f32.mrb[1].mxu0  ;;  %v4168_v51 = vld [vmem:[%s5794_s5 + $0x1d4] ss:$8 sps:$4 sm:$0xff]   ;;  %v4166_v53 = vld [vmem:[%s5794_s5 + $0x1d0] ss:$8 sps:$4 sm:$0xff]  }
 0x1b7   :  { %v411_v61 = vadd.f32 %v410_v59, %v170_v50  ;;  %v412_v62 = vpop.f32.mrb[6].mxu1  ;;  %v454_v43 = vpop.f32.mrb[2].mxu0  ;;  %v4174_v59 = vld [vmem:[%s5794_s5 + $0x1f4] ss:$8 sps:$4 sm:$0xff]   ;;  %v4172_v60 = vld [vmem:[%s5794_s5 + $0x1f0] ss:$8 sps:$4 sm:$0xff]  }
 0x1b8   :  { %v413_v63 = vadd.f32 %v412_v62, %v166_v48  ;;  %v455_v0 = vadd.f32 %v454_v43, %v174_v49  ;;  %v414_v2 = vpop.f32.mrb[7].mxu1  ;;  %v456_v3 = vpop.f32.mrb[3].mxu0  ;;  %v458_v5 = vmax.f32 %v409_v57, 0.0  ;;  %v460_v6 = vmax.f32 %v452_v58, 0.0  ;;  %v4160_v48 = vld [vmem:[%s5794_s5 + $0x1b0] ss:$8 sps:$4 sm:$0xff]  }
 0x1b9   :  { %v415_v4 = vadd.f32 %v414_v2, %v170_v50  ;;  %v459_v9 = vmax.f32 %v411_v61, 0.0  ;;  %v4165_v49 = vld [vmem:[%s5794_s5 + $0x1c4] ss:$8 sps:$4 sm:$0xff]   ;;  %v4163_v50 = vld [vmem:[%s5794_s5 + $0x1c0] ss:$8 sps:$4 sm:$0xff]  }
 0x1ba   :  { %v461_v7 = vmax.f32 %v413_v63, 0.0  ;;  %v463_v8 = vmax.f32 %v455_v0, 0.0  ;;  %v4171_v57 = vld [vmem:[%s5794_s5 + $0x1e4] ss:$8 sps:$4 sm:$0xff]   ;;  %v4169_v58 = vld [vmem:[%s5794_s5 + $0x1e0] ss:$8 sps:$4 sm:$0xff]  }
 0x1bb   :  { %v462_v10 = vmax.f32 %v415_v4, 0.0  ;;  %v4177_v61 = vld [vmem:[%s5794_s5 + $0x204] ss:$8 sps:$4 sm:$0xff]   ;;  %v4175_v62 = vld [vmem:[%s5794_s5 + $0x200] ss:$8 sps:$4 sm:$0xff]  }
 0x1bc   :  { %v464_v12 = vpack.c.bf16 %v461_v7, %v458_v5  ;;  %v466_v13 = vpack.c.bf16 %v463_v8, %v460_v6  ;;  %v4180_v43 = vld [vmem:[%s5794_s5 + $0x214] ss:$8 sps:$4 sm:$0xff]   ;;  %v4178_v63 = vld [vmem:[%s5794_s5 + $0x210] ss:$8 sps:$4 sm:$0xff]   ;;  %v4183_v0 = vld [vmem:[%s5794_s5 + $0x224] ss:$8 sps:$4 sm:$0xff]  }
 0x1bd   :  { %v465_v15 = vpack.c.bf16 %v462_v10, %v459_v9  ;;  %v4181_v2 = vld [vmem:[%s5794_s5 + $0x220] ss:$8 sps:$4 sm:$0xff]   ;;  %v4186_v3 = vld [vmem:[%s5794_s5 + $0x234] ss:$8 sps:$4 sm:$0xff]   ;;  %v4184_v4 = vld [vmem:[%s5794_s5 + $0x230] ss:$8 sps:$4 sm:$0xff]  }
 0x1be   :  { %843 = vmatmul.mubr.bf16.vlgmr.msra.gmra.mrb[4].mxu0 %v466_v13  ;;  %v4189_v5 = vld [vmem:[%s5794_s5 + $0x244] ss:$8 sps:$4 sm:$0xff]   ;;  %v4187_v6 = vld [vmem:[%s5794_s5 + $0x240] ss:$8 sps:$4 sm:$0xff]   ;;  %v4192_v7 = vld [vmem:[%s5794_s5 + $0x254] ss:$8 sps:$4 sm:$0xff]  }
 0x1bf   :  { %799 = vmatprep.mubr.bf16.mxu1 %v465_v15  ;;  %1122 = vmatpush1.bf16.msra.mxu0 %v4103_v11  ;;  %v4190_v8 = vld [vmem:[%s5794_s5 + $0x250] ss:$8 sps:$4 sm:$0xff]   ;;  %v515_v9 = vld [vmem:[%s5797_s6] sm:$0x3] }
 0x1c0   :  { %800 = vmatmul.mubr.bf16.vlgmr.msra.gmra.mrb[8].mxu1 %v464_v12  ;;  %1123 = vmatprep.subr.bf16.mxu0 %v4108_v14  ;;  %v520_v10 = vrot.slane %v515_v9, %v4679_v46  ;;  %v524_v12 = vrot.slane %v515_v9, %v4673_v44  ;;  %v4252_v9 = vld [vmem:[%s5793_s3 + $0x31c] ss:$12 sps:$4 sm:$0xff]  }
 0x1c1   :  { %1517 = vmatpush1.bf16.msra.mxu1 %v4151_v37  ;;  %v4146_v37 = vld [vmem:[%s5793_s3 + $0x1d0] ss:$12 sps:$4 sm:$0xff]  }
 0x1c2   :  { %1518 = vmatprep.subr.bf16.mxu1 %v4156_v39  ;;  %v4148_v39 = vld [vmem:[%s5793_s3 + $0x200] ss:$12 sps:$4 sm:$0xff]  }
 0x1c3   :  { %1124 = vmatpush1.bf16.msra.mxu0 %v4106_v16 }
 0x1c4   :  { %1125 = vmatprep.subr.bf16.mxu0 %v4111_v17 }
 0x1c5   :  { %1519 = vmatpush1.bf16.msra.mxu1 %v4154_v40  ;;  %v4149_v40 = vld [vmem:[%s5793_s3 + $0x218] ss:$12 sps:$4 sm:$0xff]  }
 0x1c6   :  { %1520 = vmatprep.subr.bf16.mxu1 %v4159_v41  ;;  %v4150_v41 = vld [vmem:[%s5793_s3 + $0x230] ss:$12 sps:$4 sm:$0xff]  }
 0x1c7   :  { %1126 = vmatpush1.bf16.msra.mxu0 %v4109_v18 }
 0x1c8   :  { %1127 = vmatprep.subr.bf16.mxu0 %v4114_v19 }
 0x1c9   :  { %1521 = vmatpush1.bf16.msra.mxu1 %v4157_v42  ;;  %v4195_v42 = vld [vmem:[%s5794_s5 + $0x264] ss:$8 sps:$4 sm:$0xff]  }
 0x1ca   :  { %1522 = vmatprep.subr.bf16.mxu1 %v4162_v47  ;;  %v4193_v47 = vld [vmem:[%s5794_s5 + $0x260] ss:$8 sps:$4 sm:$0xff]  }
 0x1cb   :  { %1128 = vmatpush1.bf16.msra.mxu0 %v4112_v20 }
 0x1cc   :  { %1129 = vmatprep.subr.bf16.mxu0 %v4117_v21 }
 0x1cd   :  { %1523 = vmatpush1.bf16.msra.mxu1 %v4160_v48  ;;  %v4198_v48 = vld [vmem:[%s5794_s5 + $0x274] ss:$8 sps:$4 sm:$0xff]  }
 0x1ce   :  { %1524 = vmatprep.subr.bf16.mxu1 %v4165_v49  ;;  %v4196_v49 = vld [vmem:[%s5794_s5 + $0x270] ss:$8 sps:$4 sm:$0xff]  }
 0x1cf   :  { %1130 = vmatpush1.bf16.msra.mxu0 %v4115_v22 }
 0x1d0   :  { %1131 = vmatprep.subr.bf16.mxu0 %v4120_v23 }
 0x1d1   :  { %1525 = vmatpush1.bf16.msra.mxu1 %v4163_v50  ;;  %v4201_v50 = vld [vmem:[%s5794_s5 + $0x284] ss:$8 sps:$4 sm:$0xff]  }
 0x1d2   :  { %1526 = vmatprep.subr.bf16.mxu1 %v4168_v51  ;;  %v4223_v51 = vld [vmem:[%s5793_s3 + $0x240] ss:$12 sps:$4 sm:$0xff]  }
 0x1d3   :  { %1132 = vmatpush1.bf16.msra.mxu0 %v4118_v24 }
 0x1d4   :  { %1133 = vmatprep.subr.bf16.mxu0 %v4123_v25 }
 0x1d5   :  { %1527 = vmatpush1.bf16.msra.mxu1 %v4166_v53  ;;  %v4225_v53 = vld [vmem:[%s5793_s3 + $0x244] ss:$12 sps:$4 sm:$0xff]  }
 0x1d6   :  { %1528 = vmatprep.subr.bf16.mxu1 %v4171_v57  ;;  %v4228_v57 = vld [vmem:[%s5793_s3 + $0x25c] ss:$12 sps:$4 sm:$0xff]  }
 0x1d7   :  { %1134 = vmatpush1.bf16.msra.mxu0 %v4121_v26 }
 0x1d8   :  { %1135 = vmatprep.subr.bf16.mxu0 %v4126_v27 }
 0x1d9   :  { %1529 = vmatpush1.bf16.msra.mxu1 %v4169_v58  ;;  %v4226_v58 = vld [vmem:[%s5793_s3 + $0x258] ss:$12 sps:$4 sm:$0xff]  }
 0x1da   :  { %1530 = vmatprep.subr.bf16.mxu1 %v4174_v59  ;;  %v4231_v59 = vld [vmem:[%s5793_s3 + $0x274] ss:$12 sps:$4 sm:$0xff]  }
 0x1db   :  { %1136 = vmatpush1.bf16.msra.mxu0 %v4124_v28 }
 0x1dc   :  { %1137 = vmatprep.subr.bf16.mxu0 %v4129_v29 }
 0x1dd   :  { %1531 = vmatpush1.bf16.msra.mxu1 %v4172_v60  ;;  %v4229_v60 = vld [vmem:[%s5793_s3 + $0x270] ss:$12 sps:$4 sm:$0xff]  }
 0x1de   :  { %1532 = vmatprep.subr.bf16.mxu1 %v4177_v61  ;;  %v4234_v61 = vld [vmem:[%s5793_s3 + $0x28c] ss:$12 sps:$4 sm:$0xff]  }
 0x1df   :  { %1138 = vmatpush1.bf16.msra.mxu0 %v4127_v30 }
 0x1e0   :  { %1139 = vmatprep.subr.bf16.mxu0 %v4132_v31 }
 0x1e1   :  { %1533 = vmatpush1.bf16.msra.mxu1 %v4175_v62  ;;  %v4232_v62 = vld [vmem:[%s5793_s3 + $0x288] ss:$12 sps:$4 sm:$0xff]  }
 0x1e2   :  { %1534 = vmatprep.subr.bf16.mxu1 %v4180_v43  ;;  %v4237_v43 = vld [vmem:[%s5793_s3 + $0x2a4] ss:$12 sps:$4 sm:$0xff]  }
 0x1e3   :  { %1140 = vmatpush1.bf16.msra.mxu0 %v4130_v32 }
 0x1e4   :  { %1141 = vmatprep.subr.bf16.mxu0 %v4135_v33  ;;  %v4139_v33 = vld [vmem:[%s5793_s3 + $0x128] ss:$12 sps:$4 sm:$0xff]  }
 0x1e5   :  { %1535 = vmatpush1.bf16.msra.mxu1 %v4178_v63  ;;  %v4235_v63 = vld [vmem:[%s5793_s3 + $0x2a0] ss:$12 sps:$4 sm:$0xff]  }
 0x1e6   :  { %1536 = vmatprep.subr.bf16.mxu1 %v4183_v0  ;;  %v4240_v0 = vld [vmem:[%s5793_s3 + $0x2bc] ss:$12 sps:$4 sm:$0xff]  }
 0x1e7   :  { %1142 = vmatpush1.bf16.msra.mxu0 %v4133_v34  ;;  %v4143_v34 = vld [vmem:[%s5793_s3 + $0x188] ss:$12 sps:$4 sm:$0xff]  }
 0x1e8   :  { %1143 = vmatprep.subr.bf16.mxu0 %v4138_v35  ;;  %v4144_v35 = vld [vmem:[%s5793_s3 + $0x1a0] ss:$12 sps:$4 sm:$0xff]  }
 0x1e9   :  { %1537 = vmatpush1.bf16.msra.mxu1 %v4181_v2  ;;  %v4238_v2 = vld [vmem:[%s5793_s3 + $0x2b8] ss:$12 sps:$4 sm:$0xff]  }
 0x1ea   :  { %1538 = vmatprep.subr.bf16.mxu1 %v4186_v3  ;;  %v4243_v3 = vld [vmem:[%s5793_s3 + $0x2d4] ss:$12 sps:$4 sm:$0xff]  }
 0x1eb   :  { %1144 = vmatpush1.bf16.msra.mxu0 %v4136_v36  ;;  %v4145_v36 = vld [vmem:[%s5793_s3 + $0x1b8] ss:$12 sps:$4 sm:$0xff]  }
 0x1ec   :  { %1164 = vmatprep.subr.bf16.mxu0 %v4483_v1 }
 0x1ed   :  { %1539 = vmatpush1.bf16.msra.mxu1 %v4184_v4  ;;  %v4241_v4 = vld [vmem:[%s5793_s3 + $0x2d0] ss:$12 sps:$4 sm:$0xff]  }
 0x1ee   :  { %1540 = vmatprep.subr.bf16.mxu1 %v4189_v5  ;;  %v4246_v5 = vld [vmem:[%s5793_s3 + $0x2ec] ss:$12 sps:$4 sm:$0xff]  }
 0x1f1   :  { %1541 = vmatpush1.bf16.msra.mxu1 %v4187_v6  ;;  %v4244_v6 = vld [vmem:[%s5793_s3 + $0x2e8] ss:$12 sps:$4 sm:$0xff]  }
 0x1f2   :  { %1542 = vmatprep.subr.bf16.mxu1 %v4192_v7  ;;  %v4249_v7 = vld [vmem:[%s5793_s3 + $0x304] ss:$12 sps:$4 sm:$0xff]  }
 0x1f5   :  { %1543 = vmatpush1.bf16.msra.mxu1 %v4190_v8  ;;  %v4247_v8 = vld [vmem:[%s5793_s3 + $0x300] ss:$12 sps:$4 sm:$0xff]  }
 0x1f6   :  { %1544 = vmatprep.subr.bf16.mxu1 %v4195_v42  ;;  %v4220_v42 = vld [vmem:[%s5794_s5 + $0x2f0] ss:$8 sps:$4 sm:$0xff]  }
 0x1f9   :  { %1545 = vmatpush1.bf16.msra.mxu1 %v4193_v47 }
 0x1fa   :  { %1546 = vmatprep.subr.bf16.mxu1 %v4198_v48 }
 0x1fd   :  { %1547 = vmatpush1.bf16.msra.mxu1 %v4196_v49 }
 0x1fe   :  { %1559 = vmatprep.subr.bf16.mxu1 %v4201_v50 }
 0x291   :  { %v844_v11 = vpop.f32.mrb[4].mxu0 }
 0x292   :  { %v846_v13 = vpop.f32.mrb[5].mxu0 }
 0x293   :  { %v801_v14 = vpop.f32.mrb[8].mxu1  ;;  %v848_v15 = vpop.f32.mrb[6].mxu0 }
 0x294   :  { %v802_v16 = vadd.f32 %v801_v14, %v520_v10  ;;  %v803_v17 = vpop.f32.mrb[9].mxu1  ;;  %v850_v18 = vpop.f32.mrb[7].mxu0 }
 0x295   :  { %v804_v19 = vadd.f32 %v803_v17, %v524_v12  ;;  %v805_v20 = vpop.f32.mrb[10].mxu1 }
 0x296   :  { %v845_v21 = vadd.f32 %v844_v11, %v802_v16  ;;  %v806_v22 = vadd.f32 %v805_v20, %v520_v10  ;;  %v807_v23 = vpop.f32.mrb[11].mxu1  ;;  %v4250_v10 = vld [vmem:[%s5793_s3 + $0x318] ss:$12 sps:$4 sm:$0xff]  }
 0x297   :  { %v847_v24 = vadd.f32 %v846_v13, %v804_v19  ;;  %v808_v25 = vadd.f32 %v807_v23, %v524_v12  ;;  %v3417_v11 = vld [vmem:[%s5796_s4 + $0x3] sm:$0x7] }
 0x298   :  { %v849_v26 = vadd.f32 %v848_v15, %v806_v22  ;;  %v5017_v31 = vadd.f32 %v845_v21, %v4689_v56  ;;  %v4142_v56 = vld [vmem:[%s5793_s3 + $0x170] ss:$12 sps:$4 sm:$0xff]   ;;  %v914_v12 = vrot.slane %v3417_v11, %v4679_v46  ;;  %v918_v13 = vrot.slane %v3417_v11, %v4673_v44 }
 0x299   :  { %v851_v27 = vadd.f32 %v850_v18, %v808_v25  ;;  %v5011_v29 = vadd.f32 %v847_v24, %v4685_v54  ;;  %v4140_v54 = vld [vmem:[%s5793_s3 + $0x140] ss:$12 sps:$4 sm:$0xff]   ;;  %v922_v47 = vrot.slane %v3417_v11, %v4840_v45  ;;  %v4288_v11 = vld [vmem:[%s5794_s5 + $0x354] ss:$8 sps:$4 sm:$0xff]  }
 0x29a   :  { %v5008_v28 = vadd.f32 %v849_v26, %v4683_v52 }
 0x29b   :  { %v5014_v30 = vadd.f32 %v851_v27, %v4687_v55  ;;  %v4141_v55 = vld [vmem:[%s5793_s3 + $0x158] ss:$12 sps:$4 sm:$0xff]  }
 0x29c   :  { %v857_v52 = vpack.c.bf16 %v5008_v28, %v5017_v31 }
 0x29d   :  { %v858_v32 = vpack.c.bf16 %v5014_v30, %v5011_v29 }
 0x29f   :  { %3454 = vmatprep.mubr.msk.bf16.mxu0 %vm370_vm1, %v858_v32 }
 0x2a0   :  { %1154 = vmatmul.mubr.bf16.vlgmr.msra.gmra.mrb[8].mxu0 %v857_v52 }
 0x2a1   :  { %1165 = vmatpush1.bf16.msra.mxu0 %v4139_v33  ;;  %3455 = vmatprep.mubr.msk.bf16.mxu0 %vm370_vm1, %v858_v32  ;;  %v4199_v32 = vld [vmem:[%s5794_s5 + $0x280] ss:$8 sps:$4 sm:$0xff]   ;;  %v4204_v33 = vld [vmem:[%s5794_s5 + $0x294] ss:$8 sps:$4 sm:$0xff]  }
 0x2a2   :  { %1166 = vmatprep.subr.bf16.mxu0 %v4483_v1 }
 0x2a5   :  { %1167 = vmatpush1.bf16.msra.mxu0 %v4140_v54  ;;  %v4207_v54 = vld [vmem:[%s5794_s5 + $0x2a4] ss:$8 sps:$4 sm:$0xff]  }
 0x2a6   :  { %1168 = vmatprep.subr.bf16.mxu0 %v4483_v1 }
 0x2a9   :  { %1169 = vmatpush1.bf16.msra.mxu0 %v4141_v55  ;;  %v4205_v55 = vld [vmem:[%s5794_s5 + $0x2a0] ss:$8 sps:$4 sm:$0xff]  }
 0x2aa   :  { %1170 = vmatprep.subr.bf16.mxu0 %v4483_v1 }
 0x2ad   :  { %1171 = vmatpush1.bf16.msra.mxu0 %v4142_v56  ;;  %v4210_v56 = vld [vmem:[%s5794_s5 + $0x2b4] ss:$8 sps:$4 sm:$0xff]  }
 0x2ae   :  { %1172 = vmatprep.subr.bf16.mxu0 %v4483_v1 }
 0x2b1   :  { %1173 = vmatpush1.bf16.msra.mxu0 %v4143_v34  ;;  %v4208_v34 = vld [vmem:[%s5794_s5 + $0x2b0] ss:$8 sps:$4 sm:$0xff]  }
 0x2b2   :  { %1174 = vmatprep.subr.bf16.mxu0 %v4483_v1 }
 0x2b5   :  { %1175 = vmatpush1.bf16.msra.mxu0 %v4144_v35  ;;  %v4213_v35 = vld [vmem:[%s5794_s5 + $0x2c4] ss:$8 sps:$4 sm:$0xff]  }
 0x2b6   :  { %1176 = vmatprep.subr.bf16.mxu0 %v4483_v1 }
 0x2b9   :  { %1177 = vmatpush1.bf16.msra.mxu0 %v4145_v36  ;;  %v4211_v36 = vld [vmem:[%s5794_s5 + $0x2c0] ss:$8 sps:$4 sm:$0xff]  }
 0x2ba   :  { %1178 = vmatprep.subr.bf16.mxu0 %v4483_v1 }
 0x2bd   :  { %1179 = vmatpush1.bf16.msra.mxu0 %v4146_v37  ;;  %v4216_v37 = vld [vmem:[%s5794_s5 + $0x2d4] ss:$8 sps:$4 sm:$0xff]  }
 0x2be   :  { %1180 = vmatprep.subr.bf16.mxu0 %v4483_v1 }
 0x2c1   :  { %1181 = vmatpush1.bf16.msra.mxu0 %v4147_v38  ;;  %v4214_v38 = vld [vmem:[%s5794_s5 + $0x2d0] ss:$8 sps:$4 sm:$0xff]  }
 0x2c2   :  { %1182 = vmatprep.subr.bf16.mxu0 %v4483_v1 }
 0x2c5   :  { %1183 = vmatpush1.bf16.msra.mxu0 %v4148_v39  ;;  %v4219_v39 = vld [vmem:[%s5794_s5 + $0x2e4] ss:$8 sps:$4 sm:$0xff]  }
 0x2c6   :  { %1184 = vmatprep.subr.bf16.mxu0 %v4483_v1 }
 0x2c9   :  { %1185 = vmatpush1.bf16.msra.mxu0 %v4149_v40  ;;  %v4217_v40 = vld [vmem:[%s5794_s5 + $0x2e0] ss:$8 sps:$4 sm:$0xff]  }
 0x2ca   :  { %1186 = vmatprep.subr.bf16.mxu0 %v4483_v1 }
 0x2cd   :  { %1187 = vmatpush1.bf16.msra.mxu0 %v4150_v41  ;;  %v4222_v41 = vld [vmem:[%s5794_s5 + $0x2f4] ss:$8 sps:$4 sm:$0xff]  }
 0x2ce   :  { %1870 = vmatprep.subr.bf16.mxu0 %v4225_v53 }
 0x2d0   :  { %1197 = vmatmul.mubr.bf16.vlgmr.msra.gmra.mrb[12].mxu0 %v857_v52  ;;  %v4202_v52 = vld [vmem:[%s5794_s5 + $0x290] ss:$8 sps:$4 sm:$0xff]  }
 0x2d1   :  { %1871 = vmatpush1.bf16.msra.mxu0 %v4223_v51 }
 0x2d2   :  { %1872 = vmatprep.subr.bf16.mxu0 %v4228_v57 }
 0x2d5   :  { %1873 = vmatpush1.bf16.msra.mxu0 %v4226_v58 }
 0x2d6   :  { %1874 = vmatprep.subr.bf16.mxu0 %v4231_v59 }
 0x2d9   :  { %1875 = vmatpush1.bf16.msra.mxu0 %v4229_v60 }
 0x2da   :  { %1876 = vmatprep.subr.bf16.mxu0 %v4234_v61  ;;  %v4255_v61 = vld [vmem:[%s5793_s3 + $0x334] ss:$12 sps:$4 sm:$0xff]  }
 0x2dd   :  { %1877 = vmatpush1.bf16.msra.mxu0 %v4232_v62  ;;  %v4253_v62 = vld [vmem:[%s5793_s3 + $0x330] ss:$12 sps:$4 sm:$0xff]  }
 0x2de   :  { %1878 = vmatprep.subr.bf16.mxu0 %v4237_v43  ;;  %v4258_v43 = vld [vmem:[%s5793_s3 + $0x34c] ss:$12 sps:$4 sm:$0xff]  }
 0x2e1   :  { %1879 = vmatpush1.bf16.msra.mxu0 %v4235_v63  ;;  %v4256_v63 = vld [vmem:[%s5793_s3 + $0x348] ss:$12 sps:$4 sm:$0xff]  }
 0x2e2   :  { %1880 = vmatprep.subr.bf16.mxu0 %v4240_v0  ;;  %v4271_v0 = vld [vmem:[%s5794_s5 + $0x300] ss:$8 sps:$4 sm:$0xff]  }
 0x2e5   :  { %1881 = vmatpush1.bf16.msra.mxu0 %v4238_v2  ;;  %v4273_v2 = vld [vmem:[%s5794_s5 + $0x304] ss:$8 sps:$4 sm:$0xff]  }
 0x2e6   :  { %1882 = vmatprep.subr.bf16.mxu0 %v4243_v3  ;;  %v4276_v3 = vld [vmem:[%s5794_s5 + $0x314] ss:$8 sps:$4 sm:$0xff]  }
 0x2e9   :  { %1883 = vmatpush1.bf16.msra.mxu0 %v4241_v4  ;;  %v4274_v4 = vld [vmem:[%s5794_s5 + $0x310] ss:$8 sps:$4 sm:$0xff]  }
 0x2ea   :  { %1884 = vmatprep.subr.bf16.mxu0 %v4246_v5  ;;  %v4279_v5 = vld [vmem:[%s5794_s5 + $0x324] ss:$8 sps:$4 sm:$0xff]  }
 0x2ed   :  { %1885 = vmatpush1.bf16.msra.mxu0 %v4244_v6  ;;  %v4277_v6 = vld [vmem:[%s5794_s5 + $0x320] ss:$8 sps:$4 sm:$0xff]  }
 0x2ee   :  { %1886 = vmatprep.subr.bf16.mxu0 %v4249_v7  ;;  %v4282_v7 = vld [vmem:[%s5794_s5 + $0x334] ss:$8 sps:$4 sm:$0xff]  }
 0x2f1   :  { %1887 = vmatpush1.bf16.msra.mxu0 %v4247_v8  ;;  %v4280_v8 = vld [vmem:[%s5794_s5 + $0x330] ss:$8 sps:$4 sm:$0xff]  }
 0x2f2   :  { %1888 = vmatprep.subr.bf16.mxu0 %v4252_v9  ;;  %v4285_v9 = vld [vmem:[%s5794_s5 + $0x344] ss:$8 sps:$4 sm:$0xff]  }
 0x2f5   :  { %1889 = vmatpush1.bf16.msra.mxu0 %v4250_v10  ;;  %v4283_v10 = vld [vmem:[%s5794_s5 + $0x340] ss:$8 sps:$4 sm:$0xff]  }
 0x2f6   :  { %1890 = vmatprep.subr.bf16.mxu0 %v4255_v61  ;;  %v4270_v61 = vld [vmem:[%s5793_s3 + $0x350] ss:$12 sps:$4 sm:$0xff]  }
 0x2f9   :  { %1891 = vmatpush1.bf16.msra.mxu0 %v4253_v62  ;;  %v4315_v62 = vld [vmem:[%s5794_s5 + $0x3e4] ss:$8 sps:$4 sm:$0xff]  }
 0x2fa   :  { %1892 = vmatprep.subr.bf16.mxu0 %v4258_v43  ;;  %v4313_v43 = vld [vmem:[%s5794_s5 + $0x3e0] ss:$8 sps:$4 sm:$0xff]  }
 0x2fd   :  { %1893 = vmatpush1.bf16.msra.mxu0 %v4256_v63  ;;  %v4318_v63 = vld [vmem:[%s5794_s5 + $0x3f4] ss:$8 sps:$4 sm:$0xff]  }
 0x2fe   :  { %1913 = vmatprep.subr.bf16.mxu0 %v4483_v1 }
 0x373   :  { %v1155_v14 = vpop.f32.mrb[8].mxu0 }
 0x374   :  { %v1156_v15 = vadd.f32 %v1155_v14, %v914_v12  ;;  %v1157_v16 = vpop.f32.mrb[9].mxu0  ;;  %v4289_v14 = vld [vmem:[%s5794_s5 + $0x360] ss:$8 sps:$4 sm:$0xff]  }
 0x375   :  { %v1158_v17 = vadd.f32 %v1157_v16, %v918_v13  ;;  %v1159_v18 = vpop.f32.mrb[10].mxu0  ;;  %v4292_v16 = vld [vmem:[%s5794_s5 + $0x370] ss:$8 sps:$4 sm:$0xff]  }
 0x376   :  { %v1160_v19 = vadd.f32 %v1159_v18, %v914_v12  ;;  %v1161_v20 = vpop.f32.mrb[11].mxu0  ;;  %v1205_v22 = vmax.f32 %v1156_v15, 0.0  ;;  %v4286_v12 = vld [vmem:[%s5794_s5 + $0x350] ss:$8 sps:$4 sm:$0xff]   ;;  %v4294_v15 = vld [vmem:[%s5794_s5 + $0x374] ss:$8 sps:$4 sm:$0xff]  }
 0x377   :  { %v1162_v21 = vadd.f32 %v1161_v20, %v918_v13  ;;  %v1206_v24 = vmax.f32 %v1158_v17, 0.0  ;;  %v4291_v13 = vld [vmem:[%s5794_s5 + $0x364] ss:$8 sps:$4 sm:$0xff]   ;;  %v4295_v18 = vld [vmem:[%s5794_s5 + $0x380] ss:$8 sps:$4 sm:$0xff]  }
 0x378   :  { %v1208_v23 = vmax.f32 %v1160_v19, 0.0  ;;  %v4297_v17 = vld [vmem:[%s5794_s5 + $0x384] ss:$8 sps:$4 sm:$0xff]   ;;  %v4300_v19 = vld [vmem:[%s5794_s5 + $0x394] ss:$8 sps:$4 sm:$0xff]  }
 0x379   :  { %v1209_v25 = vmax.f32 %v1162_v21, 0.0  ;;  %v4298_v20 = vld [vmem:[%s5794_s5 + $0x390] ss:$8 sps:$4 sm:$0xff]   ;;  %v4303_v21 = vld [vmem:[%s5794_s5 + $0x3a4] ss:$8 sps:$4 sm:$0xff]  }
 0x37a   :  { %v1211_v26 = vpack.c.bf16 %v1208_v23, %v1205_v22  ;;  %v4301_v22 = vld [vmem:[%s5794_s5 + $0x3a0] ss:$8 sps:$4 sm:$0xff]   ;;  %v4306_v23 = vld [vmem:[%s5794_s5 + $0x3b4] ss:$8 sps:$4 sm:$0xff]  }
 0x37b   :  { %v1212_v27 = vpack.c.bf16 %v1209_v25, %v1206_v24  ;;  %v4304_v24 = vld [vmem:[%s5794_s5 + $0x3b0] ss:$8 sps:$4 sm:$0xff]   ;;  %v4309_v25 = vld [vmem:[%s5794_s5 + $0x3c4] ss:$8 sps:$4 sm:$0xff]  }
 0x37d   :  { %1548 = vmatprep.mubr.bf16.mxu1 %v1212_v27  ;;  %v4312_v27 = vld [vmem:[%s5794_s5 + $0x3d4] ss:$8 sps:$4 sm:$0xff]  }
 0x37e   :  { %1549 = vmatmul.mubr.bf16.vlgmr.msra.gmra.mrb[12].mxu1 %v1211_v26  ;;  %v4307_v26 = vld [vmem:[%s5794_s5 + $0x3c0] ss:$8 sps:$4 sm:$0xff]  }
 0x37f   :  { %1560 = vmatpush1.bf16.msra.mxu1 %v4199_v32  ;;  %1591 = vmatprep.mubr.bf16.mxu1 %v4483_v1  ;;  %v4310_v32 = vld [vmem:[%s5794_s5 + $0x3d0] ss:$8 sps:$4 sm:$0xff]  }
 0x380   :  { %1561 = vmatprep.subr.bf16.mxu1 %v4204_v33  ;;  %v3504_v33 = vld [vmem:[%s5797_s6 + $0x2] sm:$0x3] }
 0x383   :  { %1562 = vmatpush1.bf16.msra.mxu1 %v4202_v52  ;;  %v1273_v52 = vrot.slane %v3504_v33, %v4673_v44 }
 0x384   :  { %1563 = vmatprep.subr.bf16.mxu1 %v4207_v54  ;;  %v1269_v54 = vrot.slane %v3504_v33, %v4679_v46 }
 0x387   :  { %1564 = vmatpush1.bf16.msra.mxu1 %v4205_v55 }
 0x388   :  { %1565 = vmatprep.subr.bf16.mxu1 %v4210_v56 }
 0x38b   :  { %1566 = vmatpush1.bf16.msra.mxu1 %v4208_v34 }
 0x38c   :  { %1567 = vmatprep.subr.bf16.mxu1 %v4213_v35 }
 0x38f   :  { %1568 = vmatpush1.bf16.msra.mxu1 %v4211_v36 }
 0x390   :  { %1569 = vmatprep.subr.bf16.mxu1 %v4216_v37 }
 0x393   :  { %1570 = vmatpush1.bf16.msra.mxu1 %v4214_v38 }
 0x394   :  { %1571 = vmatprep.subr.bf16.mxu1 %v4219_v39 }
 0x397   :  { %1572 = vmatpush1.bf16.msra.mxu1 %v4217_v40 }
 0x398   :  { %1573 = vmatprep.subr.bf16.mxu1 %v4222_v41 }
 0x39b   :  { %1574 = vmatpush1.bf16.msra.mxu1 %v4220_v42 }
 0x39c   :  { %2265 = vmatprep.subr.bf16.mxu1 %v4273_v2  ;;  %v4321_v2 = vld [vmem:[%s5794_s5 + $0x404] ss:$8 sps:$4 sm:$0xff]  }
 0x3a3   :  { %v1198_v48 = vpop.f32.mrb[12].mxu0 }
 0x3a4   :  { %v1199_v49 = vadd.f32 %v1198_v48, %v922_v47  ;;  %v1200_v50 = vpop.f32.mrb[13].mxu0 }
 0x3a5   :  { %v1201_v51 = vpop.f32.mrb[14].mxu0  ;;  %v4263_v50 = vld [vmem:[%s5793_s3 + $0x2a8] ss:$12 sps:$4 sm:$0xff]  }
 0x3a6   :  { %v1202_v53 = vadd.f32 %v1201_v51, %v922_v47  ;;  %v1203_v57 = vpop.f32.mrb[15].mxu0  ;;  %v1207_v58 = vmax.f32 %v1199_v49, 0.0  ;;  %v4259_v49 = vld [vmem:[%s5793_s3 + $0x248] ss:$12 sps:$4 sm:$0xff]   ;;  %v4264_v51 = vld [vmem:[%s5793_s3 + $0x2c0] ss:$12 sps:$4 sm:$0xff]  }
 0x3a7   :  { %v4266_v57 = vld [vmem:[%s5793_s3 + $0x2f0] ss:$12 sps:$4 sm:$0xff]  }
 0x3a8   :  { %v1210_v59 = vmax.f32 %v1202_v53, 0.0  ;;  %v4265_v53 = vld [vmem:[%s5793_s3 + $0x2d8] ss:$12 sps:$4 sm:$0xff]  }
 0x3aa   :  { %v1213_v60 = vpack.c.bf16 %v1210_v59, %v1207_v58  ;;  %v4267_v58 = vld [vmem:[%s5793_s3 + $0x308] ss:$12 sps:$4 sm:$0xff]   ;;  %v4268_v59 = vld [vmem:[%s5793_s3 + $0x320] ss:$12 sps:$4 sm:$0xff]  }
 0x3ac   :  { %1592 = vmatmul.mubr.bf16.vlgmr.msra.gmra.mrb[12].mxu1 %v1213_v60  ;;  %v4269_v60 = vld [vmem:[%s5793_s3 + $0x338] ss:$12 sps:$4 sm:$0xff]  }
 0x3ad   :  { %2266 = vmatpush1.bf16.msra.mxu1 %v4271_v0  ;;  %v4316_v0 = vld [vmem:[%s5794_s5 + $0x3f0] ss:$8 sps:$4 sm:$0xff]  }
 0x3ae   :  { %2267 = vmatprep.subr.bf16.mxu1 %v4276_v3  ;;  %v4343_v3 = vld [vmem:[%s5793_s3 + $0x360] ss:$12 sps:$4 sm:$0xff]  }
 0x3b1   :  { %2268 = vmatpush1.bf16.msra.mxu1 %v4274_v4  ;;  %v4345_v4 = vld [vmem:[%s5793_s3 + $0x364] ss:$12 sps:$4 sm:$0xff]  }
 0x3b2   :  { %2269 = vmatprep.subr.bf16.mxu1 %v4279_v5  ;;  %v4348_v5 = vld [vmem:[%s5793_s3 + $0x37c] ss:$12 sps:$4 sm:$0xff]  }
 0x3b5   :  { %2270 = vmatpush1.bf16.msra.mxu1 %v4277_v6  ;;  %v4346_v6 = vld [vmem:[%s5793_s3 + $0x378] ss:$12 sps:$4 sm:$0xff]  }
 0x3b6   :  { %2271 = vmatprep.subr.bf16.mxu1 %v4282_v7  ;;  %v4351_v7 = vld [vmem:[%s5793_s3 + $0x394] ss:$12 sps:$4 sm:$0xff]  }
 0x3b9   :  { %2272 = vmatpush1.bf16.msra.mxu1 %v4280_v8  ;;  %v4349_v8 = vld [vmem:[%s5793_s3 + $0x390] ss:$12 sps:$4 sm:$0xff]  }
 0x3ba   :  { %2273 = vmatprep.subr.bf16.mxu1 %v4285_v9  ;;  %v4354_v9 = vld [vmem:[%s5793_s3 + $0x3ac] ss:$12 sps:$4 sm:$0xff]  }
 0x3bd   :  { %2274 = vmatpush1.bf16.msra.mxu1 %v4283_v10  ;;  %v4352_v10 = vld [vmem:[%s5793_s3 + $0x3a8] ss:$12 sps:$4 sm:$0xff]  }
 0x3be   :  { %2275 = vmatprep.subr.bf16.mxu1 %v4288_v11  ;;  %v4357_v11 = vld [vmem:[%s5793_s3 + $0x3c4] ss:$12 sps:$4 sm:$0xff]  }
 0x3c1   :  { %2276 = vmatpush1.bf16.msra.mxu1 %v4286_v12  ;;  %v4355_v12 = vld [vmem:[%s5793_s3 + $0x3c0] ss:$12 sps:$4 sm:$0xff]  }
 0x3c2   :  { %2277 = vmatprep.subr.bf16.mxu1 %v4291_v13  ;;  %v4360_v13 = vld [vmem:[%s5793_s3 + $0x3dc] ss:$12 sps:$4 sm:$0xff]  }
 0x3c5   :  { %2278 = vmatpush1.bf16.msra.mxu1 %v4289_v14  ;;  %v4358_v14 = vld [vmem:[%s5793_s3 + $0x3d8] ss:$12 sps:$4 sm:$0xff]  }
 0x3c6   :  { %2279 = vmatprep.subr.bf16.mxu1 %v4294_v15  ;;  %v4363_v15 = vld [vmem:[%s5793_s3 + $0x3f4] ss:$12 sps:$4 sm:$0xff]  }
 0x3c9   :  { %2280 = vmatpush1.bf16.msra.mxu1 %v4292_v16  ;;  %v4361_v16 = vld [vmem:[%s5793_s3 + $0x3f0] ss:$12 sps:$4 sm:$0xff]  }
 0x3ca   :  { %2281 = vmatprep.subr.bf16.mxu1 %v4297_v17  ;;  %v4366_v17 = vld [vmem:[%s5793_s3 + $0x40c] ss:$12 sps:$4 sm:$0xff]  }
 0x3cd   :  { %2282 = vmatpush1.bf16.msra.mxu1 %v4295_v18  ;;  %v4364_v18 = vld [vmem:[%s5793_s3 + $0x408] ss:$12 sps:$4 sm:$0xff]  }
 0x3ce   :  { %2283 = vmatprep.subr.bf16.mxu1 %v4300_v19  ;;  %v4369_v19 = vld [vmem:[%s5793_s3 + $0x424] ss:$12 sps:$4 sm:$0xff]  }
 0x3d1   :  { %2284 = vmatpush1.bf16.msra.mxu1 %v4298_v20  ;;  %v4367_v20 = vld [vmem:[%s5793_s3 + $0x420] ss:$12 sps:$4 sm:$0xff]  }
 0x3d2   :  { %2285 = vmatprep.subr.bf16.mxu1 %v4303_v21  ;;  %v4372_v21 = vld [vmem:[%s5793_s3 + $0x43c] ss:$12 sps:$4 sm:$0xff]  }
 0x3d5   :  { %2286 = vmatpush1.bf16.msra.mxu1 %v4301_v22  ;;  %v4370_v22 = vld [vmem:[%s5793_s3 + $0x438] ss:$12 sps:$4 sm:$0xff]  }
 0x3d6   :  { %2287 = vmatprep.subr.bf16.mxu1 %v4306_v23  ;;  %v3601_v23 = vld [vmem:[%s5796_s4 + $0x6] sm:$0x7] }
 0x3d9   :  { %2288 = vmatpush1.bf16.msra.mxu1 %v4304_v24  ;;  %v1663_v24 = vrot.slane %v3601_v23, %v4679_v46 }
 0x3da   :  { %2289 = vmatprep.subr.bf16.mxu1 %v4309_v25  ;;  %v1667_v25 = vrot.slane %v3601_v23, %v4673_v44 }
 0x3dd   :  { %2290 = vmatpush1.bf16.msra.mxu1 %v4307_v26 }
 0x3de   :  { %2291 = vmatprep.subr.bf16.mxu1 %v4312_v27 }
 0x3e1   :  { %2292 = vmatpush1.bf16.msra.mxu1 %v4310_v32 }
 0x3e2   :  { %2293 = vmatprep.subr.bf16.mxu1 %v4315_v62  ;;  %v4340_v62 = vld [vmem:[%s5794_s5 + $0x470] ss:$8 sps:$4 sm:$0xff]  }
 0x3e5   :  { %2294 = vmatpush1.bf16.msra.mxu1 %v4313_v43  ;;  %v1671_v43 = vrot.slane %v3601_v23, %v4840_v45  ;;  %v4408_v23 = vld [vmem:[%s5794_s5 + $0x4d4] ss:$8 sps:$4 sm:$0xff]  }
 0x3e6   :  { %2295 = vmatprep.subr.bf16.mxu1 %v4318_v63 }
 0x3e9   :  { %2296 = vmatpush1.bf16.msra.mxu1 %v4316_v0 }
 0x3ea   :  { %2308 = vmatprep.subr.bf16.mxu1 %v4321_v2 }
 0x47f   :  { %v1593_v55 = vpop.f32.mrb[12].mxu1 }
 0x480   :  { %v1595_v56 = vpop.f32.mrb[13].mxu1  ;;  %v3954_v36 = vadd.f32 %v1593_v55, %v1269_v54 }
 0x481   :  { %v3955_v34 = vadd.f32 %v1595_v56, %v1273_v52  ;;  %v1597_v35 = vpop.f32.mrb[14].mxu1 }
 0x482   :  { %v3956_v37 = vadd.f32 %v1597_v35, %v1269_v54  ;;  %v1599_v38 = vpop.f32.mrb[15].mxu1  ;;  %v5311_v47 = vadd.f32 %v3954_v36, %v5017_v31  ;;  %v4262_v31 = vld [vmem:[%s5793_s3 + $0x290] ss:$12 sps:$4 sm:$0xff]  }
 0x483   :  { %v3957_v39 = vadd.f32 %v1599_v38, %v1273_v52  ;;  %v5305_v41 = vadd.f32 %v3955_v34, %v5011_v29  ;;  %v4260_v29 = vld [vmem:[%s5793_s3 + $0x260] ss:$12 sps:$4 sm:$0xff]  }
 0x484   :  { %v5302_v40 = vadd.f32 %v3956_v37, %v5008_v28 }
 0x485   :  { %v5308_v42 = vadd.f32 %v3957_v39, %v5014_v30  ;;  %v4261_v30 = vld [vmem:[%s5793_s3 + $0x278] ss:$12 sps:$4 sm:$0xff]  }
 0x486   :  { %v1606_v28 = vpack.c.bf16 %v5302_v40, %v5311_v47 }
 0x487   :  { %v1607_v48 = vpack.c.bf16 %v5308_v42, %v5305_v41 }
 0x489   :  { %3638 = vmatprep.mubr.msk.bf16.mxu0 %vm370_vm1, %v1607_v48 }
 0x48a   :  { %1903 = vmatmul.mubr.bf16.vlgmr.msra.gmra.mrb[16].mxu0 %v1606_v28 }
 0x48b   :  { %1914 = vmatpush1.bf16.msra.mxu0 %v4259_v49  ;;  %3639 = vmatprep.mubr.msk.bf16.mxu0 %vm370_vm1, %v1607_v48  ;;  %v4319_v48 = vld [vmem:[%s5794_s5 + $0x400] ss:$8 sps:$4 sm:$0xff]   ;;  %v4324_v49 = vld [vmem:[%s5794_s5 + $0x414] ss:$8 sps:$4 sm:$0xff]  }
 0x48c   :  { %1915 = vmatprep.subr.bf16.mxu0 %v4483_v1 }
 0x48f   :  { %1916 = vmatpush1.bf16.msra.mxu0 %v4260_v29  ;;  %v4327_v29 = vld [vmem:[%s5794_s5 + $0x424] ss:$8 sps:$4 sm:$0xff]  }
 0x490   :  { %1917 = vmatprep.subr.bf16.mxu0 %v4483_v1 }
 0x493   :  { %1918 = vmatpush1.bf16.msra.mxu0 %v4261_v30  ;;  %v4325_v30 = vld [vmem:[%s5794_s5 + $0x420] ss:$8 sps:$4 sm:$0xff]  }
 0x494   :  { %1919 = vmatprep.subr.bf16.mxu0 %v4483_v1 }
 0x497   :  { %1920 = vmatpush1.bf16.msra.mxu0 %v4262_v31  ;;  %v4330_v31 = vld [vmem:[%s5794_s5 + $0x434] ss:$8 sps:$4 sm:$0xff]  }
 0x498   :  { %1921 = vmatprep.subr.bf16.mxu0 %v4483_v1 }
 0x49b   :  { %1922 = vmatpush1.bf16.msra.mxu0 %v4263_v50  ;;  %v4328_v50 = vld [vmem:[%s5794_s5 + $0x430] ss:$8 sps:$4 sm:$0xff]  }
 0x49c   :  { %1923 = vmatprep.subr.bf16.mxu0 %v4483_v1 }
 0x49f   :  { %1924 = vmatpush1.bf16.msra.mxu0 %v4264_v51  ;;  %v4333_v51 = vld [vmem:[%s5794_s5 + $0x444] ss:$8 sps:$4 sm:$0xff]  }
 0x4a0   :  { %1925 = vmatprep.subr.bf16.mxu0 %v4483_v1 }
 0x4a3   :  { %1926 = vmatpush1.bf16.msra.mxu0 %v4265_v53  ;;  %v4331_v53 = vld [vmem:[%s5794_s5 + $0x440] ss:$8 sps:$4 sm:$0xff]  }
 0x4a4   :  { %1927 = vmatprep.subr.bf16.mxu0 %v4483_v1 }
 0x4a7   :  { %1928 = vmatpush1.bf16.msra.mxu0 %v4266_v57  ;;  %v4336_v57 = vld [vmem:[%s5794_s5 + $0x454] ss:$8 sps:$4 sm:$0xff]  }
 0x4a8   :  { %1929 = vmatprep.subr.bf16.mxu0 %v4483_v1 }
 0x4ab   :  { %1930 = vmatpush1.bf16.msra.mxu0 %v4267_v58  ;;  %v4334_v58 = vld [vmem:[%s5794_s5 + $0x450] ss:$8 sps:$4 sm:$0xff]  }
 0x4ac   :  { %1931 = vmatprep.subr.bf16.mxu0 %v4483_v1 }
 0x4af   :  { %1932 = vmatpush1.bf16.msra.mxu0 %v4268_v59  ;;  %v4339_v59 = vld [vmem:[%s5794_s5 + $0x464] ss:$8 sps:$4 sm:$0xff]  }
 0x4b0   :  { %1933 = vmatprep.subr.bf16.mxu0 %v4483_v1 }
 0x4b3   :  { %1934 = vmatpush1.bf16.msra.mxu0 %v4269_v60  ;;  %v4337_v60 = vld [vmem:[%s5794_s5 + $0x460] ss:$8 sps:$4 sm:$0xff]  }
 0x4b4   :  { %1935 = vmatprep.subr.bf16.mxu0 %v4483_v1 }
 0x4b7   :  { %1936 = vmatpush1.bf16.msra.mxu0 %v4270_v61  ;;  %v4342_v61 = vld [vmem:[%s5794_s5 + $0x474] ss:$8 sps:$4 sm:$0xff]  }
 0x4b8   :  { %2619 = vmatprep.subr.bf16.mxu0 %v4345_v4 }
 0x4ba   :  { %1946 = vmatmul.mubr.bf16.vlgmr.msra.gmra.mrb[20].mxu0 %v1606_v28  ;;  %v4322_v28 = vld [vmem:[%s5794_s5 + $0x410] ss:$8 sps:$4 sm:$0xff]  }
 0x4bb   :  { %2620 = vmatpush1.bf16.msra.mxu0 %v4343_v3 }
 0x4bc   :  { %2621 = vmatprep.subr.bf16.mxu0 %v4348_v5 }
 0x4bf   :  { %2622 = vmatpush1.bf16.msra.mxu0 %v4346_v6 }
 0x4c0   :  { %2623 = vmatprep.subr.bf16.mxu0 %v4351_v7 }
 0x4c3   :  { %2624 = vmatpush1.bf16.msra.mxu0 %v4349_v8 }
 0x4c4   :  { %2625 = vmatprep.subr.bf16.mxu0 %v4354_v9  ;;  %v4375_v9 = vld [vmem:[%s5793_s3 + $0x454] ss:$12 sps:$4 sm:$0xff]  }
 0x4c7   :  { %2626 = vmatpush1.bf16.msra.mxu0 %v4352_v10  ;;  %v4373_v10 = vld [vmem:[%s5793_s3 + $0x450] ss:$12 sps:$4 sm:$0xff]  }
 0x4c8   :  { %2627 = vmatprep.subr.bf16.mxu0 %v4357_v11  ;;  %v4378_v11 = vld [vmem:[%s5793_s3 + $0x46c] ss:$12 sps:$4 sm:$0xff]  }
 0x4cb   :  { %2628 = vmatpush1.bf16.msra.mxu0 %v4355_v12  ;;  %v4376_v12 = vld [vmem:[%s5793_s3 + $0x468] ss:$12 sps:$4 sm:$0xff]  }
 0x4cc   :  { %2629 = vmatprep.subr.bf16.mxu0 %v4360_v13  ;;  %v4391_v13 = vld [vmem:[%s5794_s5 + $0x480] ss:$8 sps:$4 sm:$0xff]  }
 0x4cf   :  { %2630 = vmatpush1.bf16.msra.mxu0 %v4358_v14  ;;  %v4393_v14 = vld [vmem:[%s5794_s5 + $0x484] ss:$8 sps:$4 sm:$0xff]  }
 0x4d0   :  { %2631 = vmatprep.subr.bf16.mxu0 %v4363_v15  ;;  %v4396_v15 = vld [vmem:[%s5794_s5 + $0x494] ss:$8 sps:$4 sm:$0xff]  }
 0x4d3   :  { %2632 = vmatpush1.bf16.msra.mxu0 %v4361_v16  ;;  %v4394_v16 = vld [vmem:[%s5794_s5 + $0x490] ss:$8 sps:$4 sm:$0xff]  }
 0x4d4   :  { %2633 = vmatprep.subr.bf16.mxu0 %v4366_v17  ;;  %v4399_v17 = vld [vmem:[%s5794_s5 + $0x4a4] ss:$8 sps:$4 sm:$0xff]  }
 0x4d7   :  { %2634 = vmatpush1.bf16.msra.mxu0 %v4364_v18  ;;  %v4397_v18 = vld [vmem:[%s5794_s5 + $0x4a0] ss:$8 sps:$4 sm:$0xff]  }
 0x4d8   :  { %2635 = vmatprep.subr.bf16.mxu0 %v4369_v19  ;;  %v4402_v19 = vld [vmem:[%s5794_s5 + $0x4b4] ss:$8 sps:$4 sm:$0xff]  }
 0x4db   :  { %2636 = vmatpush1.bf16.msra.mxu0 %v4367_v20  ;;  %v4400_v20 = vld [vmem:[%s5794_s5 + $0x4b0] ss:$8 sps:$4 sm:$0xff]  }
 0x4dc   :  { %2637 = vmatprep.subr.bf16.mxu0 %v4372_v21  ;;  %v4405_v21 = vld [vmem:[%s5794_s5 + $0x4c4] ss:$8 sps:$4 sm:$0xff]  }
 0x4df   :  { %2638 = vmatpush1.bf16.msra.mxu0 %v4370_v22  ;;  %v4403_v22 = vld [vmem:[%s5794_s5 + $0x4c0] ss:$8 sps:$4 sm:$0xff]  }
 0x4e0   :  { %2639 = vmatprep.subr.bf16.mxu0 %v4375_v9  ;;  %v4390_v9 = vld [vmem:[%s5793_s3 + $0x470] ss:$12 sps:$4 sm:$0xff]  }
 0x4e3   :  { %2640 = vmatpush1.bf16.msra.mxu0 %v4373_v10  ;;  %v4435_v10 = vld [vmem:[%s5794_s5 + $0x564] ss:$8 sps:$4 sm:$0xff]  }
 0x4e4   :  { %2641 = vmatprep.subr.bf16.mxu0 %v4378_v11  ;;  %v4433_v11 = vld [vmem:[%s5794_s5 + $0x560] ss:$8 sps:$4 sm:$0xff]  }
 0x4e7   :  { %2642 = vmatpush1.bf16.msra.mxu0 %v4376_v12  ;;  %v4438_v12 = vld [vmem:[%s5794_s5 + $0x574] ss:$8 sps:$4 sm:$0xff]  }
 0x4e8   :  { %2662 = vmatprep.subr.bf16.mxu0 %v4483_v1 }
 0x55d   :  { %v1904_v26 = vpop.f32.mrb[16].mxu0 }
 0x55e   :  { %v1905_v27 = vadd.f32 %v1904_v26, %v1663_v24  ;;  %v1906_v32 = vpop.f32.mrb[17].mxu0  ;;  %v4409_v26 = vld [vmem:[%s5794_s5 + $0x4e0] ss:$8 sps:$4 sm:$0xff]  }
 0x55f   :  { %v1907_v33 = vadd.f32 %v1906_v32, %v1667_v25  ;;  %v1908_v52 = vpop.f32.mrb[18].mxu0  ;;  %v4412_v32 = vld [vmem:[%s5794_s5 + $0x4f0] ss:$8 sps:$4 sm:$0xff]  }
 0x560   :  { %v1909_v54 = vadd.f32 %v1908_v52, %v1663_v24  ;;  %v1910_v55 = vpop.f32.mrb[19].mxu0  ;;  %v1954_v34 = vmax.f32 %v1905_v27, 0.0  ;;  %v4406_v24 = vld [vmem:[%s5794_s5 + $0x4d0] ss:$8 sps:$4 sm:$0xff]   ;;  %v4414_v27 = vld [vmem:[%s5794_s5 + $0x4f4] ss:$8 sps:$4 sm:$0xff]  }
 0x561   :  { %v1911_v56 = vadd.f32 %v1910_v55, %v1667_v25  ;;  %v1955_v36 = vmax.f32 %v1907_v33, 0.0  ;;  %v4411_v25 = vld [vmem:[%s5794_s5 + $0x4e4] ss:$8 sps:$4 sm:$0xff]   ;;  %v4415_v52 = vld [vmem:[%s5794_s5 + $0x500] ss:$8 sps:$4 sm:$0xff]  }
 0x562   :  { %v1957_v35 = vmax.f32 %v1909_v54, 0.0  ;;  %v4417_v33 = vld [vmem:[%s5794_s5 + $0x504] ss:$8 sps:$4 sm:$0xff]   ;;  %v4420_v54 = vld [vmem:[%s5794_s5 + $0x514] ss:$8 sps:$4 sm:$0xff]  }
 0x563   :  { %v1958_v37 = vmax.f32 %v1911_v56, 0.0  ;;  %v4418_v55 = vld [vmem:[%s5794_s5 + $0x510] ss:$8 sps:$4 sm:$0xff]   ;;  %v4423_v56 = vld [vmem:[%s5794_s5 + $0x524] ss:$8 sps:$4 sm:$0xff]  }
 0x564   :  { %v1960_v38 = vpack.c.bf16 %v1957_v35, %v1954_v34  ;;  %v4421_v34 = vld [vmem:[%s5794_s5 + $0x520] ss:$8 sps:$4 sm:$0xff]   ;;  %v4426_v35 = vld [vmem:[%s5794_s5 + $0x534] ss:$8 sps:$4 sm:$0xff]  }
 0x565   :  { %v1961_v39 = vpack.c.bf16 %v1958_v37, %v1955_v36  ;;  %v4424_v36 = vld [vmem:[%s5794_s5 + $0x530] ss:$8 sps:$4 sm:$0xff]   ;;  %v4429_v37 = vld [vmem:[%s5794_s5 + $0x544] ss:$8 sps:$4 sm:$0xff]  }
 0x567   :  { %2297 = vmatprep.mubr.bf16.mxu1 %v1961_v39  ;;  %v4432_v39 = vld [vmem:[%s5794_s5 + $0x554] ss:$8 sps:$4 sm:$0xff]  }
 0x568   :  { %2298 = vmatmul.mubr.bf16.vlgmr.msra.gmra.mrb[16].mxu1 %v1960_v38  ;;  %v4427_v38 = vld [vmem:[%s5794_s5 + $0x540] ss:$8 sps:$4 sm:$0xff]  }
 0x569   :  { %2309 = vmatpush1.bf16.msra.mxu1 %v4319_v48  ;;  %2340 = vmatprep.mubr.bf16.mxu1 %v4483_v1  ;;  %v4430_v48 = vld [vmem:[%s5794_s5 + $0x550] ss:$8 sps:$4 sm:$0xff]  }
 0x56a   :  { %2310 = vmatprep.subr.bf16.mxu1 %v4324_v49  ;;  %v3688_v49 = vld [vmem:[%s5797_s6 + $0x4] sm:$0x3] }
 0x56d   :  { %2311 = vmatpush1.bf16.msra.mxu1 %v4322_v28  ;;  %v2022_v28 = vrot.slane %v3688_v49, %v4673_v44 }
 0x56e   :  { %2312 = vmatprep.subr.bf16.mxu1 %v4327_v29  ;;  %v2018_v29 = vrot.slane %v3688_v49, %v4679_v46  ;;  %v4439_v49 = vld [vmem:[%s5794_s5 + $0x580] ss:$8 sps:$4 sm:$0xff]  }
 0x571   :  { %2313 = vmatpush1.bf16.msra.mxu1 %v4325_v30 }
 0x572   :  { %2314 = vmatprep.subr.bf16.mxu1 %v4330_v31 }
 0x575   :  { %2315 = vmatpush1.bf16.msra.mxu1 %v4328_v50 }
 0x576   :  { %2316 = vmatprep.subr.bf16.mxu1 %v4333_v51 }
 0x579   :  { %2317 = vmatpush1.bf16.msra.mxu1 %v4331_v53 }
 0x57a   :  { %2318 = vmatprep.subr.bf16.mxu1 %v4336_v57 }
 0x57d   :  { %2319 = vmatpush1.bf16.msra.mxu1 %v4334_v58 }
 0x57e   :  { %2320 = vmatprep.subr.bf16.mxu1 %v4339_v59 }
 0x581   :  { %2321 = vmatpush1.bf16.msra.mxu1 %v4337_v60 }
 0x582   :  { %2322 = vmatprep.subr.bf16.mxu1 %v4342_v61 }
 0x585   :  { %2323 = vmatpush1.bf16.msra.mxu1 %v4340_v62 }
 0x586   :  { %3014 = vmatprep.subr.bf16.mxu1 %v4393_v14  ;;  %v4441_v14 = vld [vmem:[%s5794_s5 + $0x584] ss:$8 sps:$4 sm:$0xff]  }
 0x58d   :  { %v1947_v63 = vpop.f32.mrb[20].mxu0 }
 0x58e   :  { %v1948_v0 = vadd.f32 %v1947_v63, %v1671_v43  ;;  %v1949_v2 = vpop.f32.mrb[21].mxu0 }
 0x58f   :  { %v1950_v3 = vpop.f32.mrb[22].mxu0  ;;  %v4383_v2 = vld [vmem:[%s5793_s3 + $0x3c8] ss:$12 sps:$4 sm:$0xff]  }
 0x590   :  { %v1951_v4 = vadd.f32 %v1950_v3, %v1671_v43  ;;  %v1952_v5 = vpop.f32.mrb[23].mxu0  ;;  %v1956_v6 = vmax.f32 %v1948_v0, 0.0  ;;  %v4379_v0 = vld [vmem:[%s5793_s3 + $0x368] ss:$12 sps:$4 sm:$0xff]   ;;  %v4384_v3 = vld [vmem:[%s5793_s3 + $0x3e0] ss:$12 sps:$4 sm:$0xff]  }
 0x591   :  { %v4386_v5 = vld [vmem:[%s5793_s3 + $0x410] ss:$12 sps:$4 sm:$0xff]  }
 0x592   :  { %v1959_v7 = vmax.f32 %v1951_v4, 0.0  ;;  %v4385_v4 = vld [vmem:[%s5793_s3 + $0x3f8] ss:$12 sps:$4 sm:$0xff]  }
 0x594   :  { %v1962_v8 = vpack.c.bf16 %v1959_v7, %v1956_v6  ;;  %v4387_v6 = vld [vmem:[%s5793_s3 + $0x428] ss:$12 sps:$4 sm:$0xff]   ;;  %v4388_v7 = vld [vmem:[%s5793_s3 + $0x440] ss:$12 sps:$4 sm:$0xff]  }
 0x596   :  { %2341 = vmatmul.mubr.bf16.vlgmr.msra.gmra.mrb[16].mxu1 %v1962_v8  ;;  %v4389_v8 = vld [vmem:[%s5793_s3 + $0x458] ss:$12 sps:$4 sm:$0xff]  }
 0x597   :  { %3015 = vmatpush1.bf16.msra.mxu1 %v4391_v13  ;;  %v4436_v13 = vld [vmem:[%s5794_s5 + $0x570] ss:$8 sps:$4 sm:$0xff]  }
 0x598   :  { %3016 = vmatprep.subr.bf16.mxu1 %v4396_v15  ;;  %v4463_v15 = vld [vmem:[%s5798_s7] sm:$0xff]  }
 0x59b   :  { %3017 = vmatpush1.bf16.msra.mxu1 %v4394_v16  ;;  %v4464_v16 = vld [vmem:[%s5798_s7 + $0x8] sm:$0xff]  }
 0x59c   :  { %3018 = vmatprep.subr.bf16.mxu1 %v4399_v17  ;;  %v4465_v17 = vld [vmem:[%s5798_s7 + $0x10] sm:$0xff]  }
 0x59f   :  { %3019 = vmatpush1.bf16.msra.mxu1 %v4397_v18  ;;  %v4466_v18 = vld [vmem:[%s5798_s7 + $0x18] sm:$0xff]  }
 0x5a0   :  { %3020 = vmatprep.subr.bf16.mxu1 %v4402_v19  ;;  %v4467_v19 = vld [vmem:[%s5798_s7 + $0x20] sm:$0xff]  }
 0x5a3   :  { %3021 = vmatpush1.bf16.msra.mxu1 %v4400_v20  ;;  %v4468_v20 = vld [vmem:[%s5798_s7 + $0x28] sm:$0xff]  }
 0x5a4   :  { %3022 = vmatprep.subr.bf16.mxu1 %v4405_v21  ;;  %v4469_v21 = vld [vmem:[%s5798_s7 + $0x30] sm:$0xff]  }
 0x5a7   :  { %3023 = vmatpush1.bf16.msra.mxu1 %v4403_v22  ;;  %v4470_v22 = vld [vmem:[%s5798_s7 + $0x38] sm:$0xff]  }
 0x5a8   :  { %3024 = vmatprep.subr.bf16.mxu1 %v4408_v23  ;;  %v4471_v23 = vld [vmem:[%s5798_s7 + $0x40] sm:$0xff]  }
 0x5ab   :  { %3025 = vmatpush1.bf16.msra.mxu1 %v4406_v24  ;;  %v3785_v24 = vld [vmem:[%s5796_s4 + $0x9] sm:$0x7] }
 0x5ac   :  { %3026 = vmatprep.subr.bf16.mxu1 %v4411_v25  ;;  %v2412_v25 = vrot.slane %v3785_v24, %v4679_v46 }
 0x5af   :  { %3027 = vmatpush1.bf16.msra.mxu1 %v4409_v26  ;;  %v2416_v26 = vrot.slane %v3785_v24, %v4673_v44 }
 0x5b0   :  { %3028 = vmatprep.subr.bf16.mxu1 %v4414_v27 }
 0x5b3   :  { %3029 = vmatpush1.bf16.msra.mxu1 %v4412_v32 }
 0x5b4   :  { %3030 = vmatprep.subr.bf16.mxu1 %v4417_v33 }
 0x5b7   :  { %3031 = vmatpush1.bf16.msra.mxu1 %v4415_v52 }
 0x5b8   :  { %3032 = vmatprep.subr.bf16.mxu1 %v4420_v54 }
 0x5bb   :  { %3033 = vmatpush1.bf16.msra.mxu1 %v4418_v55 }
 0x5bc   :  { %3034 = vmatprep.subr.bf16.mxu1 %v4423_v56 }
 0x5bf   :  { %3035 = vmatpush1.bf16.msra.mxu1 %v4421_v34 }
 0x5c0   :  { %3036 = vmatprep.subr.bf16.mxu1 %v4426_v35 }
 0x5c3   :  { %3037 = vmatpush1.bf16.msra.mxu1 %v4424_v36 }
 0x5c4   :  { %3038 = vmatprep.subr.bf16.mxu1 %v4429_v37 }
 0x5c7   :  { %3039 = vmatpush1.bf16.msra.mxu1 %v4427_v38 }
 0x5c8   :  { %3040 = vmatprep.subr.bf16.mxu1 %v4432_v39 }
 0x5cb   :  { %3041 = vmatpush1.bf16.msra.mxu1 %v4430_v48 }
 0x5cc   :  { %3042 = vmatprep.subr.bf16.mxu1 %v4435_v10  ;;  %v4472_v10 = vld [vmem:[%s5798_s7 + $0x48] sm:$0xff]  }
 0x5cf   :  { %3043 = vmatpush1.bf16.msra.mxu1 %v4433_v11  ;;  %v4474_v11 = vld [vmem:[%s5798_s7 + $0x58] sm:$0xff]  }
 0x5d0   :  { %3044 = vmatprep.subr.bf16.mxu1 %v4438_v12  ;;  %v3872_v12 = vld [vmem:[%s5797_s6 + $0x6] sm:$0x3] }
 0x5d3   :  { %3045 = vmatpush1.bf16.msra.mxu1 %v4436_v13  ;;  %v2767_v13 = vrot.slane %v3872_v12, %v4679_v46 }
 0x5d4   :  { %3057 = vmatprep.subr.bf16.mxu1 %v4441_v14  ;;  %v2771_v14 = vrot.slane %v3872_v12, %v4673_v44  ;;  %v3921_v44 = vld [vmem:[%s5799_s8] ss:$0 sm:$0xff] }
 0x669   :  { %v2342_v30 = vpop.f32.mrb[16].mxu1 }
 0x66a   :  { %v2344_v31 = vpop.f32.mrb[17].mxu1  ;;  %v3958_v53 = vadd.f32 %v2342_v30, %v2018_v29  ;;  %v4447_v30 = vld [vmem:[%s5794_s5 + $0x5a4] ss:$8 sps:$4 sm:$0xff]  }
 0x66b   :  { %v3959_v50 = vadd.f32 %v2344_v31, %v2022_v28  ;;  %v2346_v51 = vpop.f32.mrb[18].mxu1  ;;  %v4445_v31 = vld [vmem:[%s5794_s5 + $0x5a0] ss:$8 sps:$4 sm:$0xff]  }
 0x66c   :  { %v3960_v57 = vadd.f32 %v2346_v51, %v2018_v29  ;;  %v2348_v58 = vpop.f32.mrb[19].mxu1  ;;  %v5605_v43 = vadd.f32 %v3958_v53, %v5311_v47  ;;  %v4382_v47 = vld [vmem:[%s5793_s3 + $0x3b0] ss:$12 sps:$4 sm:$0xff]   ;;  %v4453_v53 = vld [vmem:[%s5794_s5 + $0x5c4] ss:$8 sps:$4 sm:$0xff]  }
 0x66d   :  { %v3961_v59 = vadd.f32 %v2348_v58, %v2022_v28  ;;  %v5599_v61 = vadd.f32 %v3959_v50, %v5305_v41  ;;  %v4380_v41 = vld [vmem:[%s5793_s3 + $0x380] ss:$12 sps:$4 sm:$0xff]   ;;  %v4444_v28 = vld [vmem:[%s5794_s5 + $0x594] ss:$8 sps:$4 sm:$0xff]   ;;  %v4442_v29 = vld [vmem:[%s5794_s5 + $0x590] ss:$8 sps:$4 sm:$0xff]  }
 0x66e   :  { %v5596_v60 = vadd.f32 %v3960_v57, %v5302_v40  ;;  %v4450_v50 = vld [vmem:[%s5794_s5 + $0x5b4] ss:$8 sps:$4 sm:$0xff]   ;;  %v4448_v51 = vld [vmem:[%s5794_s5 + $0x5b0] ss:$8 sps:$4 sm:$0xff]   ;;  %v4451_v57 = vld [vmem:[%s5794_s5 + $0x5c0] ss:$8 sps:$4 sm:$0xff]  }
 0x66f   :  { %v5602_v62 = vadd.f32 %v3961_v59, %v5308_v42  ;;  %v4381_v42 = vld [vmem:[%s5793_s3 + $0x398] ss:$12 sps:$4 sm:$0xff]   ;;  %v4456_v58 = vld [vmem:[%s5794_s5 + $0x5d4] ss:$8 sps:$4 sm:$0xff]  }
 0x670   :  { %v2355_v40 = vpack.c.bf16 %v5596_v60, %v5605_v43  ;;  %v4454_v59 = vld [vmem:[%s5794_s5 + $0x5d0] ss:$8 sps:$4 sm:$0xff]  }
 0x671   :  { %v2356_v63 = vpack.c.bf16 %v5602_v62, %v5599_v61 }
 0x673   :  { %3822 = vmatprep.mubr.msk.bf16.mxu0 %vm370_vm1, %v2356_v63 }
 0x674   :  { %2652 = vmatmul.mubr.bf16.vlgmr.msra.gmra.mrb[24].mxu0 %v2355_v40 }
 0x675   :  { %2663 = vmatpush1.bf16.msra.mxu0 %v4379_v0  ;;  %3823 = vmatprep.mubr.msk.bf16.mxu0 %vm370_vm1, %v2356_v63  ;;  %v4459_v63 = vld [vmem:[%s5794_s5 + $0x5e4] ss:$8 sps:$4 sm:$0xff]   ;;  %v4457_v0 = vld [vmem:[%s5794_s5 + $0x5e0] ss:$8 sps:$4 sm:$0xff]  }
 0x676   :  { %2664 = vmatprep.subr.bf16.mxu0 %v4483_v1 }
 0x679   :  { %2665 = vmatpush1.bf16.msra.mxu0 %v4380_v41  ;;  %v4460_v41 = vld [vmem:[%s5794_s5 + $0x5f0] ss:$8 sps:$4 sm:$0xff]  }
 0x67a   :  { %2666 = vmatprep.subr.bf16.mxu0 %v4483_v1 }
 0x67d   :  { %2667 = vmatpush1.bf16.msra.mxu0 %v4381_v42  ;;  %v2420_v42 = vrot.slane %v3785_v24, %v4840_v45  ;;  %v4473_v45 = vld [vmem:[%s5798_s7 + $0x50] sm:$0xff]  }
 0x67e   :  { %2668 = vmatprep.subr.bf16.mxu0 %v4483_v1 }
 0x681   :  { %2669 = vmatpush1.bf16.msra.mxu0 %v4382_v47 }
 0x682   :  { %2670 = vmatprep.subr.bf16.mxu0 %v4483_v1 }
 0x685   :  { %2671 = vmatpush1.bf16.msra.mxu0 %v4383_v2 }
 0x686   :  { %2672 = vmatprep.subr.bf16.mxu0 %v4483_v1 }
 0x689   :  { %2673 = vmatpush1.bf16.msra.mxu0 %v4384_v3 }
 0x68a   :  { %2674 = vmatprep.subr.bf16.mxu0 %v4483_v1 }
 0x68d   :  { %2675 = vmatpush1.bf16.msra.mxu0 %v4385_v4 }
 0x68e   :  { %2676 = vmatprep.subr.bf16.mxu0 %v4483_v1 }
 0x691   :  { %2677 = vmatpush1.bf16.msra.mxu0 %v4386_v5 }
 0x692   :  { %2678 = vmatprep.subr.bf16.mxu0 %v4483_v1 }
 0x695   :  { %2679 = vmatpush1.bf16.msra.mxu0 %v4387_v6 }
 0x696   :  { %2680 = vmatprep.subr.bf16.mxu0 %v4483_v1 }
 0x699   :  { %2681 = vmatpush1.bf16.msra.mxu0 %v4388_v7 }
 0x69a   :  { %2682 = vmatprep.subr.bf16.mxu0 %v4483_v1 }
 0x69d   :  { %2683 = vmatpush1.bf16.msra.mxu0 %v4389_v8 }
 0x69e   :  { %2684 = vmatprep.subr.bf16.mxu0 %v4483_v1 }
 0x6a1   :  { %2685 = vmatpush1.bf16.msra.mxu0 %v4390_v9 }
 0x6a2   :  { %3212 = vmatprep.subr.bf16.mxu0 %v4483_v1 }
 0x6a4   :  { %2695 = vmatmul.mubr.bf16.vlgmr.msra.gmra.mrb[28].mxu0 %v2355_v40  ;;  %v4462_v40 = vld [vmem:[%s5794_s5 + $0x5f4] ss:$8 sps:$4 sm:$0xff]  }
 0x6a5   :  { %3213 = vmatpush1.bf16.msra.mxu0 %v4463_v15 }
 0x6a6   :  { %3214 = vmatprep.subr.bf16.mxu0 %v4483_v1 }
 0x6a9   :  { %3215 = vmatpush1.bf16.msra.mxu0 %v4464_v16 }
 0x6aa   :  { %3216 = vmatprep.subr.bf16.mxu0 %v4483_v1 }
 0x6ad   :  { %3217 = vmatpush1.bf16.msra.mxu0 %v4465_v17 }
 0x6ae   :  { %3218 = vmatprep.subr.bf16.mxu0 %v4483_v1 }
 0x6b1   :  { %3219 = vmatpush1.bf16.msra.mxu0 %v4466_v18 }
 0x6b2   :  { %3220 = vmatprep.subr.bf16.mxu0 %v4483_v1 }
 0x6b5   :  { %3221 = vmatpush1.bf16.msra.mxu0 %v4467_v19 }
 0x6b6   :  { %3222 = vmatprep.subr.bf16.mxu0 %v4483_v1 }
 0x6b9   :  { %3223 = vmatpush1.bf16.msra.mxu0 %v4468_v20 }
 0x6ba   :  { %3224 = vmatprep.subr.bf16.mxu0 %v4483_v1 }
 0x6bd   :  { %3225 = vmatpush1.bf16.msra.mxu0 %v4469_v21 }
 0x6be   :  { %3226 = vmatprep.subr.bf16.mxu0 %v4483_v1 }
 0x6c1   :  { %3227 = vmatpush1.bf16.msra.mxu0 %v4470_v22 }
 0x6c2   :  { %3228 = vmatprep.subr.bf16.mxu0 %v4483_v1 }
 0x6c5   :  { %3229 = vmatpush1.bf16.msra.mxu0 %v4471_v23 }
 0x6c6   :  { %3230 = vmatprep.subr.bf16.mxu0 %v4483_v1 }
 0x6c9   :  { %3231 = vmatpush1.bf16.msra.mxu0 %v4472_v10 }
 0x6ca   :  { %3232 = vmatprep.subr.bf16.mxu0 %v4483_v1 }
 0x6cd   :  { %3233 = vmatpush1.bf16.msra.mxu0 %v4473_v45 }
 0x6ce   :  { %3234 = vmatprep.subr.bf16.mxu0 %v4483_v1 }
 0x6d1   :  { %3235 = vmatpush1.bf16.msra.mxu0 %v4474_v11 }
 0x747   :  { %v2653_v27 = vpop.f32.mrb[24].mxu0 }
 0x748   :  { %v2654_v32 = vadd.f32 %v2653_v27, %v2412_v25  ;;  %v2655_v33 = vpop.f32.mrb[25].mxu0 }
 0x749   :  { %v2656_v52 = vadd.f32 %v2655_v33, %v2416_v26  ;;  %v2657_v54 = vpop.f32.mrb[26].mxu0 }
 0x74a   :  { %v2658_v55 = vadd.f32 %v2657_v54, %v2412_v25  ;;  %v2659_v56 = vpop.f32.mrb[27].mxu0  ;;  %v2703_v35 = vmax.f32 %v2654_v32, 0.0 }
 0x74b   :  { %v2660_v34 = vadd.f32 %v2659_v56, %v2416_v26  ;;  %v2704_v37 = vmax.f32 %v2656_v52, 0.0 }
 0x74c   :  { %v2706_v36 = vmax.f32 %v2658_v55, 0.0 }
 0x74d   :  { %v2707_v38 = vmax.f32 %v2660_v34, 0.0 }
 0x74e   :  { %v2709_v39 = vpack.c.bf16 %v2706_v36, %v2703_v35 }
 0x74f   :  { %v2710_v48 = vpack.c.bf16 %v2707_v38, %v2704_v37 }
 0x751   :  { %3046 = vmatprep.mubr.bf16.mxu1 %v2710_v48 }
 0x752   :  { %3047 = vmatmul.mubr.bf16.vlgmr.msra.gmra.mrb[20].mxu1 %v2709_v39 }
 0x753   :  { %3058 = vmatpush1.bf16.msra.mxu1 %v4439_v49  ;;  %3089 = vmatprep.mubr.bf16.mxu1 %v4483_v1 }
 0x754   :  { %3059 = vmatprep.subr.bf16.mxu1 %v4444_v28 }
 0x757   :  { %3060 = vmatpush1.bf16.msra.mxu1 %v4442_v29 }
 0x758   :  { %3061 = vmatprep.subr.bf16.mxu1 %v4447_v30 }
 0x75b   :  { %3062 = vmatpush1.bf16.msra.mxu1 %v4445_v31 }
 0x75c   :  { %3063 = vmatprep.subr.bf16.mxu1 %v4450_v50 }
 0x75f   :  { %3064 = vmatpush1.bf16.msra.mxu1 %v4448_v51 }
 0x760   :  { %3065 = vmatprep.subr.bf16.mxu1 %v4453_v53 }
 0x763   :  { %3066 = vmatpush1.bf16.msra.mxu1 %v4451_v57 }
 0x764   :  { %3067 = vmatprep.subr.bf16.mxu1 %v4456_v58 }
 0x767   :  { %3068 = vmatpush1.bf16.msra.mxu1 %v4454_v59 }
 0x768   :  { %3069 = vmatprep.subr.bf16.mxu1 %v4459_v63 }
 0x76b   :  { %3070 = vmatpush1.bf16.msra.mxu1 %v4457_v0 }
 0x76c   :  { %3071 = vmatprep.subr.bf16.mxu1 %v4462_v40 }
 0x76f   :  { %3072 = vmatpush1.bf16.msra.mxu1 %v4460_v41 }
 0x777   :  { %v2696_v47 = vpop.f32.mrb[28].mxu0 }
 0x778   :  { %v2697_v2 = vadd.f32 %v2696_v47, %v2420_v42  ;;  %v2698_v3 = vpop.f32.mrb[29].mxu0 }
 0x779   :  { %v2699_v4 = vpop.f32.mrb[30].mxu0 }
 0x77a   :  { %v2700_v5 = vadd.f32 %v2699_v4, %v2420_v42  ;;  %v2701_v6 = vpop.f32.mrb[31].mxu0  ;;  %v2705_v7 = vmax.f32 %v2697_v2, 0.0 }
 0x77c   :  { %v2708_v8 = vmax.f32 %v2700_v5, 0.0 }
 0x77e   :  { %v2711_v9 = vpack.c.bf16 %v2708_v8, %v2705_v7 }
 0x780   :  { %3090 = vmatmul.mubr.bf16.vlgmr.msra.gmra.mrb[20].mxu1 %v2711_v9 }
 0x853   :  { %v3091_v15 = vpop.f32.mrb[20].mxu1 }
 0x854   :  { %v3962_v16 = vadd.f32 %v3091_v15, %v2767_v13  ;;  %v3093_v17 = vpop.f32.mrb[21].mxu1 }
 0x855   :  { %v3963_v18 = vadd.f32 %v3093_v17, %v2771_v14  ;;  %v3095_v19 = vpop.f32.mrb[22].mxu1 }
 0x856   :  { %v3964_v20 = vadd.f32 %v3095_v19, %v2767_v13  ;;  %v3097_v1 = vpop.f32.mrb[23].mxu1  ;;  %v3100_v22 = vadd.f32 %v3962_v16, %v5605_v43 }
 0x857   :  { %v3965_v21 = vadd.f32 %v3097_v1, %v2771_v14  ;;  %v3101_v24 = vadd.f32 %v3963_v18, %v5599_v61 }
 0x858   :  { %v3102_v23 = vadd.f32 %v3964_v20, %v5596_v60 }
 0x859   :  { %v3103_v25 = vadd.f32 %v3965_v21, %v5602_v62 }
 0x85a   :  { %v3104_v26 = vpack.c.bf16 %v3102_v23, %v3100_v22 }
 0x85b   :  { %v3105_v46 = vpack.c.bf16 %v3103_v25, %v3101_v24 }
 0x85d   :  { %3934 = vmatprep.mubr.msk.bf16.mxu0 %vm370_vm1, %v3105_v46 }
 0x85e   :  { %3245 = vmatmul.mubr.bf16.vlgmr.msra.gmra.mrb[32].mxu0 %v3104_v26 }
 0x931   :  { %v3246_v27 = vpop.f32.mrb[32].mxu0 }
 0x932   :  { %v3247_v32 = vadd.f32 %v3921_v44, %v3246_v27  ;;  %v3248_v33 = vpop.f32.mrb[33].mxu0 }
 0x933   :  { %v3249_v52 = vpop.f32.mrb[34].mxu0 }
 0x934   :  { %v3935_v43 = vmul.f32 -1.442695, %v3247_v32  ;;  %v3250_v54 = vadd.f32 %v3921_v44, %v3249_v52  ;;  %v3251_v60 = vpop.f32.mrb[35].mxu0 }
 0x936   :  { %4475 = vpow2.f32 %v3935_v43  ;;  %v3936_v61 = vmul.f32 -1.442695, %v3250_v54 }
 0x938   :  { %4477 = vpow2.f32 %v3936_v61 }
 0x940   :  { %v4476_v62 = vpop.eup %4475 }
 0x941   :  { %v3259_v55 = vadd.f32 1.0, %v4476_v62 }
 0x942   :  { %v4478_v56 = vpop.eup %4477 }
 0x943   :  { %v3260_v34 = vadd.f32 1.0, %v4478_v56  ;;  %4479 = vrcp.f32 %v3259_v55 }
 0x945   :  { %4481 = vrcp.f32 %v3260_v34 }
 0x94d   :  { %v4480_v35 = vpop.eup %4479 }
 0x94f   :  { %v4482_v36 = vpop.eup %4481 }
 0x950   :  { %v3944_v37 = vpack.c.bf16 %v4482_v36, %v4480_v35 }
 0x952   :  { %3945 = vst [vmem:[%s5800_s9] sm:$0xff] %v3944_v37  }

</bundles_post_ra>
